<compile_context>
chip_gen: v7x
topology: tpu7x:2x2x1
jax: 0.10.0
libtpu: 0.0.40
codegen_flags: <defaults>
</compile_context>

<pallas_src>
import functools
import math

import jax
import jax.numpy as jnp
import numpy as np
from jax.experimental import pallas as pl
from jax.experimental.pallas import tpu as pltpu


def _attn_kernel(x_ref, w1_ref, b1_ref, w2_ref, b2_ref, o_ref,
                 *, num_heads, batch, seq_len):
    C, BL = x_ref.shape
    H = num_heads
    Dh = C // H
    B = batch
    L = seq_len

    x = x_ref[...]              # [C, B*L]   lane index = b*L + l
    w1 = w1_ref[...]            # [3C, C]    rows ordered (qkv-component, head, dh); q rows pre-scaled
    b1 = b1_ref[...]            # [3C, 1]
    w2 = w2_ref[...]            # [C, C]     columns permuted to head-major
    b2 = b2_ref[...]            # [C, 1]

    # proj1 once over all B*L tokens: channel-major W @ x, lane-dense N = 128.
    qkv = jnp.dot(w1, x, preferred_element_type=jnp.float32) + b1      # [3C, B*L]
    # Sublane-aligned row split (Dh == 8 == sublane tile): no lane shuffles.
    qkv = qkv.reshape(3, H, Dh, BL)

    # Attention itself is per-batch (no cross-batch mixing). B is tiny & static
    # -> fully unrolled; each iteration is head-batched einsums on [H, Dh, L].
    a_cols = []
    for b in range(B):
        sl = slice(b * L, (b + 1) * L)
        q = qkv[0, :, :, sl]                                            # [H, Dh, L]
        k = qkv[1, :, :, sl]                                            # [H, Dh, L]
        v = qkv[2, :, :, sl]                                            # [H, Dh, L]

        # Key-major scores: s_T[h, m, l] = sum_d k[h,d,m] * q[h,d,l]
        # (the 1/sqrt(Dh) scale is folded into the q rows of w1/b1).
        s_t = jnp.einsum('hdm,hdl->hml', k, q,
                         preferred_element_type=jnp.float32)            # [H, L, L]

        # Softmax over the key axis m (sublane axis); denom reciprocal on EUP.
        mx = jnp.max(s_t, axis=1, keepdims=True)
        p = jnp.exp(s_t - mx)
        p = p * pl.reciprocal(jnp.sum(p, axis=1, keepdims=True), approx=True)

        # PV is a natural matmul: contract m = lane of v, sublane of p -> no
        # operand transposes are required.
        a = jnp.einsum('hdm,hml->hdl', v, p,
                       preferred_element_type=jnp.float32)              # [H, Dh, L]
        a_cols.append(a.reshape(C, L))                                  # head-major rows

    a_full = jnp.concatenate(a_cols, axis=-1)                           # [C, B*L]

    # proj2 once, channel-major, lane-dense; single unmasked [C, B*L] store.
    out = jnp.dot(w2, a_full, preferred_element_type=jnp.float32) + b2  # [C, B*L]
    o_ref[...] = out.astype(o_ref.dtype)


def attention_forward(x, W1, b1, W2, b2, num_heads):
    """x: [B, C, H, W] (NCHW, like the PyTorch module). Returns [B, C, H, W].

    Matches the PyTorch module with dropout_prob = 0.0 (eval mode).
    """
    B, C, Himg, Wimg = x.shape
    L = Himg * Wimg
    Dh = C // num_heads
    scale = 1.0 / math.sqrt(Dh)

    # NCHW -> [C, B*L]: one small (~16 KiB) wrapper-side transpose so the kernel
    # sees a lane-dense token axis (lane index = b*L + l).
    x_cbl = x.reshape(B, C, L).transpose(1, 0, 2).reshape(C, B * L)

    # Fold the einops rearranges (and the 1/sqrt(Dh) attention scale) into
    # one-time weight permutations (param-load-time work in a real module).
    # proj1 output index o = d*(H*3) + h*3 + k   ('b L (C H K) -> K b H L C')
    #   -> reorder rows to o_new = k*C + h*Dh + d  (q|k|v blocks, head-major).
    W1p = W1.reshape(Dh, num_heads, 3, C).transpose(2, 1, 0, 3).reshape(3 * C, C)
    b1p = b1.reshape(Dh, num_heads, 3).transpose(2, 1, 0).reshape(3 * C, 1)
    # Fold the softmax scale into the q block (rows [0, C)).
    W1p = W1p.at[:C].multiply(scale)
    b1p = b1p.at[:C].multiply(scale)
    # proj2 input index i = d*H + h   ('b H (h w) C -> b h w (C H)')
    #   -> reorder columns to i_new = h*Dh + d  (kernel's head-major layout).
    W2p = W2.reshape(C, Dh, num_heads).transpose(0, 2, 1).reshape(C, C)
    b2p = b2.reshape(C, 1)

    # Advisory cost estimate for XLA's scheduler (tiny, overhead-bound call).
    flops = (2 * (3 * C) * C * B * L                 # proj1
             + 2 * B * num_heads * L * L * Dh        # QK^T
             + 2 * B * num_heads * L * L * Dh        # PV
             + 2 * C * C * B * L)                    # proj2
    transcendentals = B * num_heads * L * L          # exp
    bytes_accessed = 4 * (2 * C * B * L + 3 * C * C + 3 * C + C * C + C)

    out = pl.pallas_call(
        functools.partial(_attn_kernel, num_heads=num_heads, batch=B, seq_len=L),
        out_shape=jax.ShapeDtypeStruct((C, B * L), x.dtype),
        # Single invocation (no grid): every operand resident in VMEM as one block.
        in_specs=[pl.BlockSpec(memory_space=pltpu.MemorySpace.VMEM)] * 5,
        out_specs=pl.BlockSpec(memory_space=pltpu.MemorySpace.VMEM),
        cost_estimate=pl.CostEstimate(flops=flops,
                                      transcendentals=transcendentals,
                                      bytes_accessed=bytes_accessed),
    )(x_cbl, W1p, b1p, W2p, b2p)

    # [C, B*L] -> NCHW (inverse of the input transform; ~16 KiB, XLA-side).
    return out.reshape(C, B, L).transpose(1, 0, 2).reshape(B, C, Himg, Wimg)


def reference_forward(x, W1, b1, W2, b2, num_heads):
    """Pure-JAX replica of the exact PyTorch forward (for verification)."""
    B, C, Hh, Ww = x.shape
    L = Hh * Ww
    Dh = C // num_heads
    z = jnp.transpose(x.reshape(B, C, L), (0, 2, 1))                 # b L c
    y = z @ W1.T + b1                                                # b L 3C
    y = y.reshape(B, L, Dh, num_heads, 3)                            # (C H K)
    y = jnp.transpose(y, (4, 0, 3, 1, 2))                            # K b H L C
    q, k, v = y[0], y[1], y[2]
    s = jnp.einsum('bhlc,bhmc->bhlm', q, k) / math.sqrt(Dh)
    p = jax.nn.softmax(s, axis=-1)
    a = jnp.einsum('bhlm,bhmc->bhlc', p, v)                          # b H L Dh
    a = a.reshape(B, num_heads, Hh, Ww, Dh)
    a = jnp.transpose(a, (0, 2, 3, 4, 1)).reshape(B, Hh, Ww, C)      # (C H)
    o = a @ W2.T + b2
    return jnp.transpose(o, (0, 3, 1, 2))


if __name__ == "__main__":
    # Module config: Attention(C=32, num_heads=4, dropout_prob=0.0)
    B, C, Himg, Wimg = 2, 32, 8, 8
    num_heads = 4

    key = jax.random.PRNGKey(0)
    kx, k1, k2, k3, k4 = jax.random.split(key, 5)

    x = jax.random.normal(kx, (B, C, Himg, Wimg), dtype=jnp.float32)
    # proj1: Linear(C, 3C); proj2: Linear(C, C)  (deterministic synthetic init)
    W1 = jax.random.normal(k1, (3 * C, C), dtype=jnp.float32) * (1.0 / math.sqrt(C))
    b1 = jax.random.normal(k2, (3 * C,), dtype=jnp.float32) * 0.02
    W2 = jax.random.normal(k3, (C, C), dtype=jnp.float32) * (1.0 / math.sqrt(C))
    b2 = jax.random.normal(k4, (C,), dtype=jnp.float32) * 0.02

    fwd = jax.jit(attention_forward, static_argnames=("num_heads",))
    out = fwd(x, W1, b1, W2, b2, num_heads=num_heads)
    out = jax.block_until_ready(out)

    ref = reference_forward(x, W1, b1, W2, b2, num_heads)
    # Tolerance relaxed slightly vs. 1e-4 because the approx (EUP) reciprocal on
    # the softmax denominator changes low-order bits; real layout/permutation
    # bugs would produce O(1) errors and still be caught.
    np.testing.assert_allclose(np.asarray(out), np.asarray(ref), rtol=2e-3, atol=2e-3)

    print("KERNEL_OK")
</pallas_src>

<mosaic_0001>
module attributes {stable_mosaic.version = 11 : i64} {
  func.func @_attn_kernel(%arg0: memref<32x128xf32, #tpu.memory_space<vmem>>, %arg1: memref<96x32xf32, #tpu.memory_space<vmem>>, %arg2: memref<96x1xf32, #tpu.memory_space<vmem>>, %arg3: memref<32x32xf32, #tpu.memory_space<vmem>>, %arg4: memref<32x1xf32, #tpu.memory_space<vmem>>, %arg5: memref<32x128xf32, #tpu.memory_space<vmem>>) attributes {dimension_semantics = [], scalar_prefetch = 0 : i64, scratch_operands = 0 : i64, tpu.core_type = #tpu.core_type<tc>} {
    %c0 = arith.constant 0 : index
    %c0_0 = arith.constant 0 : index
    %0 = vector.load %arg0[%c0, %c0_0] : memref<32x128xf32, #tpu.memory_space<vmem>>, vector<32x128xf32>
    %c0_1 = arith.constant 0 : index
    %c0_2 = arith.constant 0 : index
    %1 = vector.load %arg1[%c0_1, %c0_2] : memref<96x32xf32, #tpu.memory_space<vmem>>, vector<96x32xf32>
    %c0_3 = arith.constant 0 : index
    %c0_4 = arith.constant 0 : index
    %2 = vector.load %arg2[%c0_3, %c0_4] : memref<96x1xf32, #tpu.memory_space<vmem>>, vector<96x1xf32>
    %c0_5 = arith.constant 0 : index
    %c0_6 = arith.constant 0 : index
    %3 = vector.load %arg3[%c0_5, %c0_6] : memref<32x32xf32, #tpu.memory_space<vmem>>, vector<32x32xf32>
    %c0_7 = arith.constant 0 : index
    %c0_8 = arith.constant 0 : index
    %4 = vector.load %arg4[%c0_7, %c0_8] : memref<32x1xf32, #tpu.memory_space<vmem>>, vector<32x1xf32>
    %cst = arith.constant dense<0.000000e+00> : vector<96x128xf32>
    %5 = tpu.matmul %1, %0, %cst {dimension_numbers = #tpu.dot_dimension_numbers<[1], [0], [0], [1], [0, 0, 1, 1], [], []>} : vector<96x32xf32>, vector<32x128xf32>, vector<96x128xf32> -> vector<96x128xf32>
    %6 = vector.broadcast %2 : vector<96x1xf32> to vector<96x128xf32>
    %7 = arith.addf %5, %6 : vector<96x128xf32>
    %8 = vector.shape_cast %7 : vector<96x128xf32> to vector<3x4x8x128xf32>
    %9 = vector.extract_strided_slice %8 {offsets = [0, 0, 0, 0], sizes = [1, 4, 8, 64], strides = [1, 1, 1, 1]} : vector<3x4x8x128xf32> to vector<1x4x8x64xf32>
    %10 = vector.shape_cast %9 : vector<1x4x8x64xf32> to vector<4x8x64xf32>
    %11 = vector.extract_strided_slice %8 {offsets = [1, 0, 0, 0], sizes = [1, 4, 8, 64], strides = [1, 1, 1, 1]} : vector<3x4x8x128xf32> to vector<1x4x8x64xf32>
    %12 = vector.shape_cast %11 : vector<1x4x8x64xf32> to vector<4x8x64xf32>
    %13 = vector.extract_strided_slice %8 {offsets = [2, 0, 0, 0], sizes = [1, 4, 8, 64], strides = [1, 1, 1, 1]} : vector<3x4x8x128xf32> to vector<1x4x8x64xf32>
    %14 = vector.shape_cast %13 : vector<1x4x8x64xf32> to vector<4x8x64xf32>
    "tpu.trace_start"() <{level = 10 : i32, message = "hdm,hdl->hml"}> : () -> ()
    %cst_9 = arith.constant dense<0.000000e+00> : vector<4x64x64xf32>
    %15 = tpu.matmul %12, %10, %cst_9 {dimension_numbers = #tpu.dot_dimension_numbers<[1], [1], [2], [2], [0, 0, 0, 2, 1, 2], [0], [0]>} : vector<4x8x64xf32>, vector<4x8x64xf32>, vector<4x64x64xf32> -> vector<4x64x64xf32>
    "tpu.trace_stop"() : () -> ()
    %cst_10 = arith.constant dense<0xFF800000> : vector<4x64xf32>
    %16 = vector.multi_reduction <maximumf>, %15, %cst_10 [1] : vector<4x64x64xf32> to vector<4x64xf32>
    %17 = vector.shape_cast %16 : vector<4x64xf32> to vector<4x1x64xf32>
    %18 = vector.broadcast %17 : vector<4x1x64xf32> to vector<4x64x64xf32>
    %19 = arith.subf %15, %18 : vector<4x64x64xf32>
    %20 = math.exp %19 : vector<4x64x64xf32>
    %cst_11 = arith.constant dense<0.000000e+00> : vector<4x64xf32>
    %21 = vector.multi_reduction <add>, %20, %cst_11 [1] : vector<4x64x64xf32> to vector<4x64xf32>
    %22 = vector.shape_cast %21 : vector<4x64xf32> to vector<4x1x64xf32>
    %23 = tpu.reciprocal %22 {approx = true} : vector<4x1x64xf32> -> vector<4x1x64xf32>
    %24 = vector.broadcast %23 : vector<4x1x64xf32> to vector<4x64x64xf32>
    %25 = arith.mulf %20, %24 : vector<4x64x64xf32>
    "tpu.trace_start"() <{level = 10 : i32, message = "hdm,hml->hdl"}> : () -> ()
    %cst_12 = arith.constant dense<0.000000e+00> : vector<4x8x64xf32>
    %26 = tpu.matmul %14, %25, %cst_12 {dimension_numbers = #tpu.dot_dimension_numbers<[2], [1], [1], [2], [0, 0, 0, 1, 1, 2], [0], [0]>} : vector<4x8x64xf32>, vector<4x64x64xf32>, vector<4x8x64xf32> -> vector<4x8x64xf32>
    "tpu.trace_stop"() : () -> ()
    %27 = vector.shape_cast %26 : vector<4x8x64xf32> to vector<32x64xf32>
    %28 = vector.extract_strided_slice %8 {offsets = [0, 0, 0, 64], sizes = [1, 4, 8, 64], strides = [1, 1, 1, 1]} : vector<3x4x8x128xf32> to vector<1x4x8x64xf32>
    %29 = vector.shape_cast %28 : vector<1x4x8x64xf32> to vector<4x8x64xf32>
    %30 = vector.extract_strided_slice %8 {offsets = [1, 0, 0, 64], sizes = [1, 4, 8, 64], strides = [1, 1, 1, 1]} : vector<3x4x8x128xf32> to vector<1x4x8x64xf32>
    %31 = vector.shape_cast %30 : vector<1x4x8x64xf32> to vector<4x8x64xf32>
    %32 = vector.extract_strided_slice %8 {offsets = [2, 0, 0, 64], sizes = [1, 4, 8, 64], strides = [1, 1, 1, 1]} : vector<3x4x8x128xf32> to vector<1x4x8x64xf32>
    %33 = vector.shape_cast %32 : vector<1x4x8x64xf32> to vector<4x8x64xf32>
    "tpu.trace_start"() <{level = 10 : i32, message = "hdm,hdl->hml"}> : () -> ()
    %cst_13 = arith.constant dense<0.000000e+00> : vector<4x64x64xf32>
    %34 = tpu.matmul %31, %29, %cst_13 {dimension_numbers = #tpu.dot_dimension_numbers<[1], [1], [2], [2], [0, 0, 0, 2, 1, 2], [0], [0]>} : vector<4x8x64xf32>, vector<4x8x64xf32>, vector<4x64x64xf32> -> vector<4x64x64xf32>
    "tpu.trace_stop"() : () -> ()
    %cst_14 = arith.constant dense<0xFF800000> : vector<4x64xf32>
    %35 = vector.multi_reduction <maximumf>, %34, %cst_14 [1] : vector<4x64x64xf32> to vector<4x64xf32>
    %36 = vector.shape_cast %35 : vector<4x64xf32> to vector<4x1x64xf32>
    %37 = vector.broadcast %36 : vector<4x1x64xf32> to vector<4x64x64xf32>
    %38 = arith.subf %34, %37 : vector<4x64x64xf32>
    %39 = math.exp %38 : vector<4x64x64xf32>
    %cst_15 = arith.constant dense<0.000000e+00> : vector<4x64xf32>
    %40 = vector.multi_reduction <add>, %39, %cst_15 [1] : vector<4x64x64xf32> to vector<4x64xf32>
    %41 = vector.shape_cast %40 : vector<4x64xf32> to vector<4x1x64xf32>
    %42 = tpu.reciprocal %41 {approx = true} : vector<4x1x64xf32> -> vector<4x1x64xf32>
    %43 = vector.broadcast %42 : vector<4x1x64xf32> to vector<4x64x64xf32>
    %44 = arith.mulf %39, %43 : vector<4x64x64xf32>
    "tpu.trace_start"() <{level = 10 : i32, message = "hdm,hml->hdl"}> : () -> ()
    %cst_16 = arith.constant dense<0.000000e+00> : vector<4x8x64xf32>
    %45 = tpu.matmul %33, %44, %cst_16 {dimension_numbers = #tpu.dot_dimension_numbers<[2], [1], [1], [2], [0, 0, 0, 1, 1, 2], [0], [0]>} : vector<4x8x64xf32>, vector<4x64x64xf32>, vector<4x8x64xf32> -> vector<4x8x64xf32>
    "tpu.trace_stop"() : () -> ()
    %46 = vector.shape_cast %45 : vector<4x8x64xf32> to vector<32x64xf32>
    %47 = tpu.concatenate %27, %46 in 1 : vector<32x64xf32>, vector<32x64xf32> -> vector<32x128xf32>
    %cst_17 = arith.constant dense<0.000000e+00> : vector<32x128xf32>
    %48 = tpu.matmul %3, %47, %cst_17 {dimension_numbers = #tpu.dot_dimension_numbers<[1], [0], [0], [1], [0, 0, 1, 1], [], []>} : vector<32x32xf32>, vector<32x128xf32>, vector<32x128xf32> -> vector<32x128xf32>
    %49 = vector.broadcast %4 : vector<32x1xf32> to vector<32x128xf32>
    %50 = arith.addf %48, %49 : vector<32x128xf32>
    %c0_18 = arith.constant 0 : index
    %c0_19 = arith.constant 0 : index
    %51 = vector.load %arg5[%c0_18, %c0_19] : memref<32x128xf32, #tpu.memory_space<vmem>>, vector<32x128xf32>
    tpu.vector_store %arg5[%c0_18, %c0_19], %50 {strides = array<i32>} : memref<32x128xf32, #tpu.memory_space<vmem>>, vector<32x128xf32>,
    return
  }
}

</mosaic_0001>

<bundles_post_ra>
// kernel: attention_forward.1
= control target key start
LH: loop header
LB: loop body
LE: loop exit
PB: predicated region body
PF: predicated region fallthrough
CT: control target
= control target key end

     0   :  { %vm116_vm0 = vcmask 261120   ;;  %v3768_v3 = vmov 0   ;;  %vm310_vm1 = vcmask 64512   ;;  %vm923_vm2 = vcmask 523264   ;;  %s4833_s0 = inlined_call_operand.vmem [shape: f32[32,128], index: 0, kind: input, shape index: {}]   ;;  %s4834_s1 = inlined_call_operand.vmem [shape: f32[96,32], index: 1, kind: input, shape index: {}]   ;;  %s4835_s2 = inlined_call_operand.vmem [shape: f32[96,1], index: 2, kind: input, shape index: {}]   ;;  %s4836_s4 = inlined_call_operand.vmem [shape: f32[32,1], index: 4, kind: input, shape index: {}]   ;;  %s4837_s3 = inlined_call_operand.vmem [shape: f32[32,32], index: 3, kind: input, shape index: {}]   ;;  %s4838_s5 = inlined_call_operand.vmem [shape: f32[32,128], index: 5, kind: output, shape index: {}]  }
   0x1   :  { %v20_v0 = vld [vmem:[%s4833_s0] sm:$0xff]  ;;  %v21_v1 = vld [vmem:[%s4833_s0 + $0x8] sm:$0xff]  ;;  %v22_v2 = vld [vmem:[%s4833_s0 + $0x10] sm:$0xff]  ;;  %3612 = vset.pattern.permute.xlu0 %v3768_v3  ;;  %3613 = vset.pattern.permute.xlu1 %v3768_v3  ;;  %vm3771_vm3 = vmmov 0  }
   0x2   :  { %v3493_v4 = vpack.c.bf16 %v21_v1, %v20_v0  ;;  %v23_v5 = vld [vmem:[%s4833_s0 + $0x18] sm:$0xff]  ;;  %v24_v6 = vld [vmem:[%s4834_s1] sm:$0xff]  ;;  %v41_v10 = vld [vmem:[%s4835_s2 + $0x28] sm:$0xff] }
   0x3   :  { %v3497_v7 = vpack.c.bf16 %v23_v5, %v22_v2  ;;  %3197 = vmatprep.mubr.msk.f32.mxu0 %vm116_vm0, %v24_v6  ;;  %v40_v8 = vld [vmem:[%s4835_s2 + $0x20] sm:$0xff]  ;;  %v43_v9 = vld [vmem:[%s4835_s2 + $0x38] sm:$0xff]  ;;  %v25_v12 = vld [vmem:[%s4834_s1 + $0x8] sm:$0xff] }
   0x4   :  { %3494 = vmatprep.subr.bf16.mxu0 %v3493_v4  ;;  %78 = vperm.xlu0 %3612, %v40_v8   ;;  %v36_v11 = vld [vmem:[%s4835_s2] sm:$0xff]  ;;  %v26_v13 = vld [vmem:[%s4834_s1 + $0x10] sm:$0xff]  ;;  %v37_v15 = vld [vmem:[%s4835_s2 + $0x8] sm:$0xff] }
   0x5   :  { %3496 = vmatpush3.bf16.msra.mxu0 %v3493_v4  ;;  %93 = vperm.xlu1 %3613, %v43_v9   ;;  %v42_v14 = vld [vmem:[%s4835_s2 + $0x30] sm:$0xff]  ;;  %v27_v16 = vld [vmem:[%s4834_s1 + $0x18] sm:$0xff]  ;;  %v28_v17 = vld [vmem:[%s4834_s1 + $0x20] sm:$0xff] }
   0x6   :  { %3498 = vmatprep.subr.bf16.mxu0 %v3497_v7  ;;  %v39_v18 = vld [vmem:[%s4835_s2 + $0x18] sm:$0xff]  ;;  %v29_v19 = vld [vmem:[%s4834_s1 + $0x28] sm:$0xff]  ;;  %v30_v20 = vld [vmem:[%s4834_s1 + $0x30] sm:$0xff] }
   0x7   :  { %v38_v21 = vld [vmem:[%s4835_s2 + $0x10] sm:$0xff]  ;;  %v31_v22 = vld [vmem:[%s4834_s1 + $0x38] sm:$0xff]  ;;  %v32_v23 = vld [vmem:[%s4834_s1 + $0x40] sm:$0xff] }
   0x8   :  { %83 = vperm.xlu0 %3612, %v41_v10   ;;  %v33_v24 = vld [vmem:[%s4834_s1 + $0x48] sm:$0xff]  ;;  %v34_v25 = vld [vmem:[%s4834_s1 + $0x50] sm:$0xff]  ;;  %v35_v26 = vld [vmem:[%s4834_s1 + $0x58] sm:$0xff]  ;;  %s3769_s1 = smov 64  }
   0x9   :  { %3500 = vmatpush3.bf16.msra.mxu0 %v3497_v7  ;;  %58 = vperm.xlu1 %3613, %v36_v11   ;;  %v45_v51 = vld [vmem:[%s4835_s2 + $0x48] sm:$0xff]  ;;  %v44_v53 = vld [vmem:[%s4835_s2 + $0x40] sm:$0xff]  ;;  %v47_v54 = vld [vmem:[%s4835_s2 + $0x58] sm:$0xff] }
   0xa   :  { %v46_v56 = vld [vmem:[%s4835_s2 + $0x50] sm:$0xff] }
   0xc   :  { %3198 = vmatmul.mubr.msk.f32.vlgmr.msra.gmra.mrb[0].mxu0 %vm116_vm0, %v25_v12  ;;  %88 = vperm.xlu0 %3612, %v42_v14  }
   0xd   :  { %3200 = vmatprep.mubr.msk.f32.mxu0 %vm116_vm0, %v26_v13  ;;  %63 = vperm.xlu1 %3613, %v37_v15  }
  0x10   :  { %3201 = vmatmul.mubr.msk.f32.gmra.mrb[2].mxu0 %vm116_vm0, %v27_v16  ;;  %73 = vperm.xlu0 %3612, %v39_v18  }
  0x11   :  { %3203 = vmatprep.mubr.msk.f32.mxu0 %vm116_vm0, %v28_v17 }
  0x14   :  { %3204 = vmatmul.mubr.msk.f32.gmra.mrb[4].mxu0 %vm116_vm0, %v29_v19  ;;  %68 = vperm.xlu0 %3612, %v38_v21  }
  0x15   :  { %3206 = vmatprep.mubr.msk.f32.mxu0 %vm116_vm0, %v30_v20 }
  0x18   :  { %3207 = vmatmul.mubr.msk.f32.gmra.mrb[6].mxu0 %vm116_vm0, %v31_v22 }
  0x19   :  { %3209 = vmatprep.mubr.msk.f32.mxu0 %vm116_vm0, %v32_v23 }
  0x1c   :  { %3210 = vmatmul.mubr.msk.f32.gmra.mrb[8].mxu0 %vm116_vm0, %v33_v24 }
  0x1d   :  { %3212 = vmatprep.mubr.msk.f32.mxu0 %vm116_vm0, %v34_v25 }
  0x20   :  { %3213 = vmatmul.mubr.msk.f32.gmra.mrb[10].mxu0 %vm116_vm0, %v35_v26 }
  0x83   :  { %v79_v27 = vpop.permute.xlu0 %78 }
  0x84   :  { %v94_v29 = vpop.permute.xlu1 %93 }
  0x87   :  { %v84_v28 = vpop.permute.xlu0 %83 }
  0x88   :  { %v59_v31 = vpop.permute.xlu1 %58 }
  0x8b   :  { %v89_v30 = vpop.permute.xlu0 %88 }
  0x8c   :  { %v64_v34 = vpop.permute.xlu1 %63 }
  0x8f   :  { %v74_v32 = vpop.permute.xlu0 %73 }
  0x93   :  { %v69_v37 = vpop.permute.xlu0 %68 }
  0xdf   :  { %v3199_v33 = vpop.f32.mrb[0].mxu0 }
  0xe0   :  { %v219_v35 = vpop.f32.mrb[1].mxu0  ;;  %v225_v38 = vadd.f32 %v3199_v33, %v64_v34 }
  0xe1   :  { %v220_v36 = vadd.f32 %v219_v35, %v59_v31 }
  0xe3   :  { %v3202_v39 = vpop.f32.mrb[2].mxu0  ;;  %3215 = vmatprep.subr.mxu1 %v220_v36 }
  0xe4   :  { %v229_v40 = vpop.f32.mrb[3].mxu0  ;;  %3216 = vmatpush3.msra.mxu1 %v220_v36  ;;  %v235_v58 = vadd.f32 %v3202_v39, %v74_v32 }
  0xe5   :  { %v230_v41 = vadd.f32 %v229_v40, %v69_v37  ;;  %3229 = vmatprep.subr.mxu1 %v225_v38  ;;  %v3770_v40 = vmov 0.0|0.0  }
  0xe7   :  { %v3205_v42 = vpop.f32.mrb[4].mxu0  ;;  %3243 = vmatprep.subr.mxu0 %v230_v41 }
  0xe8   :  { %v245_v43 = vadd.f32 %v3205_v42, %v84_v28  ;;  %v239_v44 = vpop.f32.mrb[5].mxu0  ;;  %3244 = vmatpush3.msra.mxu0 %v230_v41 }
  0xe9   :  { %v240_v45 = vadd.f32 %v239_v44, %v79_v27  ;;  %3501 = vmatprep.subr.bf16.mxu0 %v3770_v40 }
  0xea   :  { %440 = vxpose.xlu0.b32.start.end [1/1] (short) (narrow) %v245_v43, 64 }
  0xeb   :  { %v3208_v46 = vpop.f32.mrb[6].mxu0  ;;  %278 = vxpose.xlu1.b32.start.end [1/1] (short) (narrow) %v240_v45, 64 }
  0xec   :  { %v249_v47 = vpop.f32.mrb[7].mxu0  ;;  %v255_v48 = vadd.f32 %v3208_v46, %v94_v29  ;;  %v3772_v46 = vmov 0.0  }
  0xed   :  { %v250_v49 = vadd.f32 %v249_v47, %v89_v30 }
  0xef   :  { %v3888_v50 = vpop.f32.mrb[8].mxu0 }
  0xf0   :  { %v3893_v52 = vpop.f32.mrb[9].mxu0 }
  0xf3   :  { %v3902_v55 = vpop.f32.mrb[10].mxu0 }
  0xf4   :  { %v3908_v57 = vpop.f32.mrb[11].mxu0 }
 0x107   :  { %762 = vxpose.xlu0.b32.start.end [1/1] (short) (narrow) %v255_v48, 64 }
 0x108   :  { %601 = vxpose.xlu1.b32.start.end [1/1] (short) (narrow) %v250_v49, 64 }
 0x142   :  { %1686 = vrot.lane.b32.xlu1 %v245_v43, %s3769_s1 }
 0x146   :  { %103 = vperm.xlu1 %3613, %v45_v51  }
 0x14a   :  { %98 = vperm.xlu1 %3613, %v44_v53  }
 0x14c   :  { %1517 = vrot.lane.b32.xlu0 %v240_v45, %s3769_s1 }
 0x14e   :  { %2024 = vrot.lane.b32.xlu1 %v255_v48, %s3769_s1 }
 0x150   :  { %113 = vperm.xlu0 %3612, %v47_v54  }
 0x152   :  { %108 = vperm.xlu1 %3613, %v46_v56  }
 0x154   :  { %1553 = vrot.lane.b32.xlu0 %v220_v36, %s3769_s1 }
 0x156   :  { %1722 = vrot.lane.b32.xlu1 %v225_v38, %s3769_s1 }
 0x158   :  { %1855 = vrot.lane.b32.xlu0 %v250_v49, %s3769_s1 }
 0x15a   :  { %1891 = vrot.lane.b32.xlu1 %v230_v41, %s3769_s1 }
 0x15e   :  { %2060 = vrot.lane.b32.xlu1 %v235_v58, %s3769_s1 }
 0x16a   :  { %v456_v59 = vpop.trf.xlu0 }
 0x16b   :  { %v294_v60 = vpop.trf.xlu1 }
 0x16c   :  { %3217 = vmatprep.mubr.msk.f32.mxu1 %vm310_vm1, %v294_v60 }
 0x16e   :  { %v457_v61 = vpop.trf.xlu0 }
 0x16f   :  { %v295_v62 = vpop.trf.xlu1 }
 0x170   :  { %3218 = vmatmul.mubr.msk.f32.vlgmr.msra.gmra.mrb[0].mxu1 %vm310_vm1, %v295_v62 }
 0x171   :  { %3230 = vmatpush3.msra.mxu1 %v225_v38 }
 0x172   :  { %3257 = vmatprep.subr.mxu1 %v235_v58  ;;  %v458_v63 = vpop.trf.xlu0 }
 0x173   :  { %v296_v0 = vpop.trf.xlu1 }
 0x174   :  { %3220 = vmatprep.mubr.msk.f32.mxu1 %vm310_vm1, %v296_v0 }
 0x176   :  { %v459_v1 = vpop.trf.xlu0 }
 0x177   :  { %v297_v2 = vpop.trf.xlu1 }
 0x178   :  { %3221 = vmatmul.mubr.msk.f32.gmra.mrb[2].mxu1 %vm310_vm1, %v297_v2 }
 0x17a   :  { %v460_v3 = vpop.trf.xlu0 }
 0x17b   :  { %v298_v4 = vpop.trf.xlu1 }
 0x17c   :  { %3223 = vmatprep.mubr.msk.f32.mxu1 %vm310_vm1, %v298_v4 }
 0x17e   :  { %v461_v5 = vpop.trf.xlu0 }
 0x17f   :  { %v299_v6 = vpop.trf.xlu1 }
 0x180   :  { %3224 = vmatmul.mubr.msk.f32.gmra.mrb[4].mxu1 %vm310_vm1, %v299_v6 }
 0x182   :  { %v462_v7 = vpop.trf.xlu0 }
 0x183   :  { %v300_v8 = vpop.trf.xlu1 }
 0x184   :  { %3226 = vmatprep.mubr.msk.f32.mxu1 %vm310_vm1, %v300_v8 }
 0x186   :  { %v463_v9 = vpop.trf.xlu0 }
 0x187   :  { %v301_v10 = vpop.trf.xlu1 }
 0x188   :  { %3227 = vmatmul.mubr.msk.f32.gmra.mrb[6].mxu1 %vm310_vm1, %v301_v10 }
 0x189   :  { %3231 = vmatprep.mubr.msk.f32.mxu1 %vm310_vm1, %v456_v59 }
 0x18a   :  { %v778_v11 = vpop.trf.xlu0 }
 0x18b   :  { %v617_v12 = vpop.trf.xlu1 }
 0x18c   :  { %3232 = vmatmul.mubr.msk.f32.vlgmr.msra.gmra.mrb[8].mxu1 %vm310_vm1, %v457_v61  ;;  %3245 = vmatprep.mubr.msk.f32.mxu0 %vm310_vm1, %v617_v12 }
 0x18d   :  { %3258 = vmatpush3.msra.mxu1 %v235_v58  ;;  %3234 = vmatprep.mubr.msk.f32.mxu1 %vm310_vm1, %v458_v63 }
 0x18e   :  { %v779_v13 = vpop.trf.xlu0  ;;  %3513 = vmatprep.subr.bf16.mxu1 %v3770_v40 }
 0x18f   :  { %v618_v14 = vpop.trf.xlu1 }
 0x190   :  { %3235 = vmatmul.mubr.msk.f32.gmra.mrb[10].mxu1 %vm310_vm1, %v459_v1  ;;  %3246 = vmatmul.mubr.msk.f32.vlgmr.msra.gmra.mrb[12].mxu0 %vm310_vm1, %v618_v14 }
 0x191   :  { %3237 = vmatprep.mubr.msk.f32.mxu1 %vm310_vm1, %v460_v3 }
 0x192   :  { %v780_v15 = vpop.trf.xlu0 }
 0x193   :  { %v619_v16 = vpop.trf.xlu1 }
 0x194   :  { %3238 = vmatmul.mubr.msk.f32.gmra.mrb[12].mxu1 %vm310_vm1, %v461_v5  ;;  %3248 = vmatprep.mubr.msk.f32.mxu0 %vm310_vm1, %v619_v16 }
 0x195   :  { %3240 = vmatprep.mubr.msk.f32.mxu1 %vm310_vm1, %v462_v7 }
 0x196   :  { %v781_v17 = vpop.trf.xlu0 }
 0x197   :  { %v620_v18 = vpop.trf.xlu1 }
 0x198   :  { %3241 = vmatmul.mubr.msk.f32.gmra.mrb[14].mxu1 %vm310_vm1, %v463_v9  ;;  %3249 = vmatmul.mubr.msk.f32.gmra.mrb[14].mxu0 %vm310_vm1, %v620_v18 }
 0x199   :  { %3259 = vmatprep.mubr.msk.f32.mxu1 %vm310_vm1, %v778_v11 }
 0x19a   :  { %v782_v19 = vpop.trf.xlu0 }
 0x19b   :  { %v621_v20 = vpop.trf.xlu1 }
 0x19c   :  { %3260 = vmatmul.mubr.msk.f32.vlgmr.msra.gmra.mrb[16].mxu1 %vm310_vm1, %v779_v13  ;;  %3251 = vmatprep.mubr.msk.f32.mxu0 %vm310_vm1, %v621_v20 }
 0x19d   :  { %3262 = vmatprep.mubr.msk.f32.mxu1 %vm310_vm1, %v780_v15 }
 0x19e   :  { %v783_v21 = vpop.trf.xlu0 }
 0x19f   :  { %v622_v22 = vpop.trf.xlu1 }
 0x1a0   :  { %3252 = vmatmul.mubr.msk.f32.gmra.mrb[16].mxu0 %vm310_vm1, %v622_v22  ;;  %3263 = vmatmul.mubr.msk.f32.gmra.mrb[18].mxu1 %vm310_vm1, %v781_v17 }
 0x1a1   :  { %3265 = vmatprep.mubr.msk.f32.mxu1 %vm310_vm1, %v782_v19 }
 0x1a2   :  { %v784_v23 = vpop.trf.xlu0 }
 0x1a3   :  { %v623_v24 = vpop.trf.xlu1 }
 0x1a4   :  { %3266 = vmatmul.mubr.msk.f32.gmra.mrb[20].mxu1 %vm310_vm1, %v783_v21  ;;  %3254 = vmatprep.mubr.msk.f32.mxu0 %vm310_vm1, %v623_v24 }
 0x1a5   :  { %3268 = vmatprep.mubr.msk.f32.mxu1 %vm310_vm1, %v784_v23 }
 0x1a6   :  { %v785_v25 = vpop.trf.xlu0 }
 0x1a7   :  { %v624_v26 = vpop.trf.xlu1 }
 0x1a8   :  { %3255 = vmatmul.mubr.msk.f32.gmra.mrb[18].mxu0 %vm310_vm1, %v624_v26  ;;  %3269 = vmatmul.mubr.msk.f32.gmra.mrb[22].mxu1 %vm310_vm1, %v785_v25 }
 0x1a9   :  { %3287 = vmatprep.mubr.msk.f32.mxu0 %vm3771_vm3, %v3772_v46  ;;  %3306 = vmatprep.mubr.msk.f32.mxu1 %vm3771_vm3, %v3772_v46 }
 0x1b4   :  { %v1687_v27 = vpop.permute.xlu1 %1686 }
 0x1b5   :  { %1689 = vxpose.xlu1.b32.start.end [1/1] (short) (narrow) %v1687_v27, 64 }
 0x1be   :  { %v1518_v28 = vpop.permute.xlu0 %1517 }
 0x1bf   :  { %1520 = vxpose.xlu0.b32.start.end [1/1] (short) (narrow) %v1518_v28, 64 }
 0x1c5   :  { %v104_v29 = vpop.permute.xlu1 %103 }
 0x1c6   :  { %v3948_v30 = vadd.f32 %v3888_v50, %v104_v29 }
 0x1c9   :  { %v99_v31 = vpop.permute.xlu1 %98 }
 0x1ca   :  { %v3951_v32 = vadd.f32 %v3893_v52, %v99_v31 }
 0x1cd   :  { %v2025_v35 = vpop.permute.xlu1 %2024 }
 0x1cf   :  { %v114_v33 = vpop.permute.xlu0 %113 }
 0x1d0   :  { %v3954_v34 = vadd.f32 %v3902_v55, %v114_v33 }
 0x1d1   :  { %v109_v38 = vpop.permute.xlu1 %108 }
 0x1d2   :  { %2027 = vxpose.xlu1.b32.start.end [1/1] (short) (narrow) %v2025_v35, 64  ;;  %v3963_v39 = vadd.f32 %v3908_v57, %v109_v38 }
 0x1d3   :  { %v3956_v36 = vpop.permute.xlu0 %1553 }
 0x1d7   :  { %v1856_v37 = vpop.permute.xlu0 %1855 }
 0x1dc   :  { %1858 = vxpose.xlu0.b32.start.end [1/1] (short) (narrow) %v1856_v37, 64 }
 0x20c   :  { %2566 = vrot.lane.b32.xlu1 %v3948_v30, %s3769_s1 }
 0x221   :  { %2492 = vrot.lane.b32.xlu0 %v3951_v32, %s3769_s1 }
 0x225   :  { %2640 = vrot.lane.b32.xlu0 %v3963_v39, %s3769_s1 }
 0x229   :  { %2714 = vrot.lane.b32.xlu0 %v3954_v34, %s3769_s1 }
 0x243   :  { %v3971_v41 = vpop.f32.mrb[0].mxu1 }
 0x244   :  { %v925_v42 = vsel %vm923_vm2, %v3971_v41, -inf  ;;  %v3975_v43 = vpop.f32.mrb[1].mxu1 }
 0x245   :  { %v924_v44 = vsel %vm923_vm2, %v3975_v43, -inf }
 0x246   :  { %v926_v45 = vmax.f32 %v924_v44, %v925_v42 }
 0x24b   :  { %v3983_v47 = vpop.f32.mrb[2].mxu1 }
 0x24c   :  { %v3985_v48 = vpop.f32.mrb[3].mxu1  ;;  %v929_v51 = vsel %vm923_vm2, %v3983_v47, -inf }
 0x24d   :  { %v927_v49 = vsel %vm923_vm2, %v3985_v48, -inf }
 0x24e   :  { %v928_v50 = vmax.f32 %v926_v45, %v927_v49 }
 0x250   :  { %v930_v52 = vmax.f32 %v928_v50, %v929_v51 }
 0x253   :  { %v3991_v53 = vpop.f32.mrb[4].mxu1 }
 0x254   :  { %v3993_v54 = vpop.f32.mrb[5].mxu1  ;;  %v933_v57 = vsel %vm923_vm2, %v3991_v53, -inf }
 0x255   :  { %v931_v55 = vsel %vm923_vm2, %v3993_v54, -inf }
 0x256   :  { %v932_v56 = vmax.f32 %v930_v52, %v931_v55 }
 0x258   :  { %v934_v58 = vmax.f32 %v932_v56, %v933_v57 }
 0x25b   :  { %v3999_v59 = vpop.f32.mrb[6].mxu1 }
 0x25c   :  { %v4001_v60 = vpop.f32.mrb[7].mxu1  ;;  %v937_v63 = vsel %vm923_vm2, %v3999_v59, -inf }
 0x25d   :  { %v935_v61 = vsel %vm923_vm2, %v4001_v60, -inf }
 0x25e   :  { %v936_v62 = vmax.f32 %v934_v58, %v935_v61 }
 0x25f   :  { %v4007_v0 = vpop.f32.mrb[8].mxu1 }
 0x260   :  { %v938_v1 = vmax.f32 %v936_v62, %v937_v63  ;;  %v946_v2 = vsel %vm923_vm2, %v4007_v0, -inf  ;;  %v4011_v3 = vpop.f32.mrb[9].mxu1 }
 0x261   :  { %v945_v4 = vsel %vm923_vm2, %v4011_v3, -inf }
 0x262   :  { %v939_v5 = vrot.slane %v938_v1, 4  ;;  %v947_v6 = vmax.f32 %v945_v4, %v946_v2 }
 0x263   :  { %v4015_v7 = vpop.f32.mrb[10].mxu1  ;;  %v4017_v8 = vpop.f32.mrb[12].mxu0 }
 0x264   :  { %v940_v9 = vmax.f32 %v938_v1, %v939_v5  ;;  %v4019_v10 = vpop.f32.mrb[11].mxu1  ;;  %v967_v11 = vsel %vm923_vm2, %v4017_v8, -inf  ;;  %v4023_v12 = vpop.f32.mrb[13].mxu0  ;;  %v950_v18 = vsel %vm923_vm2, %v4015_v7, -inf }
 0x265   :  { %v948_v13 = vsel %vm923_vm2, %v4019_v10, -inf  ;;  %v966_v14 = vsel %vm923_vm2, %v4023_v12, -inf }
 0x266   :  { %v941_v15 = vrot.slane %v940_v9, 2  ;;  %v949_v16 = vmax.f32 %v947_v6, %v948_v13  ;;  %v968_v17 = vmax.f32 %v966_v14, %v967_v11 }
 0x267   :  { %v4031_v19 = vpop.f32.mrb[12].mxu1 }
 0x268   :  { %v942_v20 = vmax.f32 %v940_v9, %v941_v15  ;;  %v4033_v21 = vpop.f32.mrb[13].mxu1  ;;  %v951_v22 = vmax.f32 %v949_v16, %v950_v18  ;;  %v954_v26 = vsel %vm923_vm2, %v4031_v19, -inf }
 0x269   :  { %v952_v23 = vsel %vm923_vm2, %v4033_v21, -inf }
 0x26a   :  { %v943_v24 = vrot.slane %v942_v20, 1  ;;  %v953_v25 = vmax.f32 %v951_v22, %v952_v23 }
 0x26b   :  { %v4039_v27 = vpop.f32.mrb[14].mxu0  ;;  %v4041_v28 = vpop.f32.mrb[14].mxu1 }
 0x26c   :  { %v944_v29 = vmax.f32 %v942_v20, %v943_v24  ;;  %v4043_v31 = vpop.f32.mrb[15].mxu1  ;;  %v955_v33 = vmax.f32 %v953_v25, %v954_v26  ;;  %v4045_v35 = vpop.f32.mrb[15].mxu0  ;;  %v971_v37 = vsel %vm923_vm2, %v4039_v27, -inf }
 0x26d   :  { %v956_v38 = vsel %vm923_vm2, %v4043_v31, -inf  ;;  %v969_v42 = vsel %vm923_vm2, %v4045_v35, -inf }
 0x26e   :  { %v1008_v44 = vsub.f32 %v3975_v43, %v944_v29  ;;  %v1009_v45 = vsub.f32 %v3971_v41, %v944_v29  ;;  %v1010_v49 = vsub.f32 %v3985_v48, %v944_v29  ;;  %v1011_v50 = vsub.f32 %v3983_v47, %v944_v29 }
 0x26f   :  { %v1012_v51 = vsub.f32 %v3993_v54, %v944_v29  ;;  %v1013_v52 = vsub.f32 %v3991_v53, %v944_v29  ;;  %v1014_v55 = vsub.f32 %v4001_v60, %v944_v29  ;;  %v1015_v56 = vsub.f32 %v3999_v59, %v944_v29  ;;  %v4061_v57 = vpop.f32.mrb[16].mxu1 }
 0x270   :  { %v1040_v58 = vmul.f32 1.442695, %v1008_v44  ;;  %v1042_v61 = vmul.f32 1.442695, %v1009_v45  ;;  %v1044_v62 = vmul.f32 1.442695, %v1010_v49  ;;  %v957_v43 = vmax.f32 %v955_v33, %v956_v38 }
 0x271   :  { %v1046_v63 = vmul.f32 1.442695, %v1011_v50  ;;  %v958_v41 = vsel %vm923_vm2, %v4041_v28, -inf  ;;  %v970_v48 = vmax.f32 %v968_v17, %v969_v42  ;;  %v1048_v47 = vmul.f32 1.442695, %v1012_v51  ;;  %v4065_v1 = vpop.f32.mrb[17].mxu1 }
 0x272   :  { %3624 = vpow2.f32 %v1040_v58  ;;  %v959_v54 = vmax.f32 %v957_v43, %v958_v41  ;;  %v988_v53 = vsel %vm923_vm2, %v4061_v57, -inf  ;;  %v987_v59 = vsel %vm923_vm2, %v4065_v1, -inf }
 0x273   :  { %3626 = vpow2.f32 %v1042_v61  ;;  %v4071_v60 = vpop.f32.mrb[16].mxu0  ;;  %v4073_v2 = vpop.f32.mrb[18].mxu1  ;;  %v972_v4 = vmax.f32 %v970_v48, %v971_v37  ;;  %v989_v6 = vmax.f32 %v987_v59, %v988_v53  ;;  %v1050_v13 = vmul.f32 1.442695, %v1013_v52 }
 0x274   :  { %3628 = vpow2.f32 %v1044_v62  ;;  %v960_v5 = vrot.slane %v959_v54, 4  ;;  %v4075_v9 = vpop.f32.mrb[17].mxu0  ;;  %v4077_v11 = vpop.f32.mrb[19].mxu1  ;;  %v975_v17 = vsel %vm923_vm2, %v4071_v60, -inf  ;;  %v1052_v22 = vmul.f32 1.442695, %v1014_v55 }
 0x275   :  { %3630 = vpow2.f32 %v1046_v63  ;;  %v973_v14 = vsel %vm923_vm2, %v4075_v9, -inf  ;;  %v990_v15 = vsel %vm923_vm2, %v4077_v11, -inf  ;;  %v992_v23 = vsel %vm923_vm2, %v4073_v2, -inf }
 0x276   :  { %v961_v16 = vmax.f32 %v959_v54, %v960_v5  ;;  %v974_v18 = vmax.f32 %v972_v4, %v973_v14  ;;  %v991_v20 = vmax.f32 %v989_v6, %v990_v15  ;;  %3632 = vpow2.f32 %v1048_v47 }
 0x277   :  { %v4087_v24 = vpop.f32.mrb[20].mxu1  ;;  %3634 = vpow2.f32 %v1050_v13  ;;  %v1054_v33 = vmul.f32 1.442695, %v1015_v56 }
 0x278   :  { %v962_v25 = vrot.slane %v961_v16, 2  ;;  %v4089_v26 = vpop.f32.mrb[21].mxu1  ;;  %v993_v29 = vmax.f32 %v991_v20, %v992_v23  ;;  %v976_v38 = vmax.f32 %v974_v18, %v975_v17  ;;  %3636 = vpow2.f32 %v1052_v22 }
 0x279   :  { %v994_v37 = vsel %vm923_vm2, %v4089_v26, -inf  ;;  %v996_v45 = vsel %vm923_vm2, %v4087_v24, -inf  ;;  %3638 = vpow2.f32 %v1054_v33 }
 0x27a   :  { %v963_v42 = vmax.f32 %v961_v16, %v962_v25  ;;  %v995_v44 = vmax.f32 %v993_v29, %v994_v37 }
 0x27b   :  { %v4095_v49 = vpop.f32.mrb[18].mxu0  ;;  %v4097_v50 = vpop.f32.mrb[22].mxu1 }
 0x27c   :  { %v4099_v51 = vpop.eup %3624  ;;  %v964_v52 = vrot.slane %v963_v42, 1  ;;  %v4101_v55 = vpop.f32.mrb[19].mxu0  ;;  %v997_v58 = vmax.f32 %v995_v44, %v996_v45  ;;  %v979_v20 = vsel %vm923_vm2, %v4095_v49, -inf }
 0x27d   :  { %v4103_v56 = vpop.f32.mrb[23].mxu1  ;;  %v4105_v61 = vpop.eup %3626  ;;  %v1104_v62 = vsel %vm923_vm2, %v4099_v51, 0.0  ;;  %v977_v43 = vsel %vm923_vm2, %v4101_v55, -inf }
 0x27e   :  { %v998_v63 = vsel %vm923_vm2, %v4103_v56, -inf  ;;  %v4113_v41 = vpop.eup %3628  ;;  %v1105_v48 = vsel %vm923_vm2, %v4105_v61, 0.0  ;;  %v965_v47 = vmax.f32 %v963_v42, %v964_v52  ;;  %v978_v54 = vmax.f32 %v976_v38, %v977_v43 }
 0x27f   :  { %v999_v53 = vmax.f32 %v997_v58, %v998_v63  ;;  %v4117_v59 = vpop.eup %3630  ;;  %v1106_v4 = vadd.f32 %v1105_v48, %v1104_v62  ;;  %v1107_v5 = vsel %vm923_vm2, %v4113_v41, 0.0 }
 0x280   :  { %v1016_v6 = vsub.f32 %v4011_v3, %v965_v47  ;;  %v1017_v13 = vsub.f32 %v4007_v0, %v965_v47  ;;  %v1018_v14 = vsub.f32 %v4019_v10, %v965_v47  ;;  %v4124_v15 = vpop.eup %3632  ;;  %v1019_v17 = vsub.f32 %v4015_v7, %v965_v47 }
 0x281   :  { %v1108_v16 = vadd.f32 %v1107_v5, %v1106_v4  ;;  %v1020_v18 = vsub.f32 %v4033_v21, %v965_v47  ;;  %v1109_v22 = vsel %vm923_vm2, %v4117_v59, 0.0  ;;  %v1021_v23 = vsub.f32 %v4031_v19, %v965_v47  ;;  %v4135_v10 = vpop.eup %3634 }
 0x282   :  { %v1022_v3 = vsub.f32 %v4043_v31, %v965_v47  ;;  %v1023_v0 = vsub.f32 %v4041_v28, %v965_v47  ;;  %v1056_v29 = vmul.f32 1.442695, %v1016_v6  ;;  %v1058_v33 = vmul.f32 1.442695, %v1017_v13  ;;  %v4139_v42 = vpop.eup %3636 }
 0x283   :  { %v1110_v25 = vadd.f32 %v1109_v22, %v1108_v16  ;;  %v1111_v7 = vsel %vm923_vm2, %v4124_v15, 0.0  ;;  %v1060_v21 = vmul.f32 1.442695, %v1018_v14  ;;  %v1062_v37 = vmul.f32 1.442695, %v1019_v17  ;;  %v4145_v58 = vpop.eup %3638 }
 0x284   :  { %v980_v38 = vmax.f32 %v978_v54, %v979_v20  ;;  %3640 = vpow2.f32 %v1056_v29  ;;  %v1064_v19 = vmul.f32 1.442695, %v1020_v18  ;;  %v1000_v31 = vsel %vm923_vm2, %v4097_v50, -inf }
 0x285   :  { %v1112_v44 = vadd.f32 %v1111_v7, %v1110_v25  ;;  %v1113_v28 = vsel %vm923_vm2, %v4135_v10, 0.0  ;;  %3642 = vpow2.f32 %v1058_v33  ;;  %v1066_v45 = vmul.f32 1.442695, %v1021_v23 }
 0x286   :  { %v981_v52 = vrot.slane %v980_v38, 4  ;;  %3644 = vpow2.f32 %v1060_v21  ;;  %v1068_v43 = vmul.f32 1.442695, %v1022_v3  ;;  %v1001_v63 = vmax.f32 %v999_v53, %v1000_v31 }
 0x287   :  { %v1114_v62 = vadd.f32 %v1113_v28, %v1112_v44  ;;  %v1115_v48 = vsel %vm923_vm2, %v4139_v42, 0.0  ;;  %3646 = vpow2.f32 %v1062_v37  ;;  %v1070_v47 = vmul.f32 1.442695, %v1023_v0 }
 0x288   :  { %v982_v54 = vmax.f32 %v980_v38, %v981_v52  ;;  %3648 = vpow2.f32 %v1064_v19  ;;  %v1002_v5 = vrot.slane %v1001_v63, 4  ;;  %v1117_v6 = vsel %vm923_vm2, %v4145_v58, 0.0 }
 0x289   :  { %v1116_v4 = vadd.f32 %v1115_v48, %v1114_v62  ;;  %3650 = vpow2.f32 %v1066_v45 }
 0x28a   :  { %v983_v13 = vrot.slane %v982_v54, 2  ;;  %3652 = vpow2.f32 %v1068_v43  ;;  %v1003_v16 = vmax.f32 %v1001_v63, %v1002_v5 }
 0x28b   :  { %v1118_v14 = vadd.f32 %v1117_v6, %v1116_v4  ;;  %3654 = vpow2.f32 %v1070_v47 }
 0x28c   :  { %v984_v17 = vmax.f32 %v982_v54, %v983_v13  ;;  %v1004_v18 = vrot.slane %v1003_v16, 2 }
 0x28d   :  { %v1119_v53 = vrot.slane %v1118_v14, 4 }
 0x28e   :  { %v985_v20 = vrot.slane %v984_v17, 1  ;;  %v4151_v22 = vpop.eup %3640  ;;  %v1005_v29 = vmax.f32 %v1003_v16, %v1004_v18 }
 0x28f   :  { %v1120_v23 = vadd.f32 %v1119_v53, %v1118_v14  ;;  %v4153_v3 = vpop.eup %3642  ;;  %v1125_v0 = vsel %vm923_vm2, %v4151_v22, 0.0 }
 0x290   :  { %v986_v25 = vmax.f32 %v984_v17, %v985_v20  ;;  %v4157_v33 = vpop.eup %3644  ;;  %v1126_v21 = vsel %vm923_vm2, %v4153_v3, 0.0 }
 0x291   :  { %v1121_v7 = vrot.slane %v1120_v23, 2  ;;  %v4161_v37 = vpop.eup %3646  ;;  %v1127_v38 = vadd.f32 %v1126_v21, %v1125_v0  ;;  %v1128_v45 = vsel %vm923_vm2, %v4157_v33, 0.0 }
 0x292   :  { %v1024_v44 = vsub.f32 %v4023_v12, %v986_v25  ;;  %v1025_v19 = vsub.f32 %v4017_v8, %v986_v25  ;;  %v4165_v31 = vpop.eup %3648  ;;  %v1026_v52 = vsub.f32 %v4045_v35, %v986_v25  ;;  %v1027_v62 = vsub.f32 %v4039_v27, %v986_v25 }
 0x293   :  { %v1122_v28 = vadd.f32 %v1121_v7, %v1120_v23  ;;  %v4171_v43 = vpop.eup %3650  ;;  %v1129_v63 = vadd.f32 %v1128_v45, %v1127_v38  ;;  %v1028_v48 = vsub.f32 %v4075_v9, %v986_v25  ;;  %v1029_v47 = vsub.f32 %v4071_v60, %v986_v25 }
 0x294   :  { %v1006_v12 = vrot.slane %v1005_v29, 1  ;;  %v4175_v54 = vpop.eup %3652  ;;  %v1130_v4 = vsel %vm923_vm2, %v4161_v37, 0.0  ;;  %v1030_v5 = vsub.f32 %v4101_v55, %v986_v25  ;;  %v1031_v35 = vsub.f32 %v4095_v49, %v986_v25 }
 0x295   :  { %v1123_v8 = vrot.slane %v1122_v28, 1  ;;  %v4181_v6 = vpop.eup %3654  ;;  %v1131_v27 = vadd.f32 %v1130_v4, %v1129_v63  ;;  %v1132_v13 = vsel %vm923_vm2, %v4165_v31, 0.0  ;;  %v1072_v9 = vmul.f32 1.442695, %v1024_v44 }
 0x296   :  { %v1074_v14 = vmul.f32 1.442695, %v1025_v19  ;;  %v1134_v16 = vsel %vm923_vm2, %v4171_v43, 0.0  ;;  %v1136_v17 = vsel %vm923_vm2, %v4175_v54, 0.0  ;;  %v1076_v53 = vmul.f32 1.442695, %v1026_v52 }
 0x297   :  { %v1124_v60 = vadd.f32 %v1123_v8, %v1122_v28  ;;  %v1133_v18 = vadd.f32 %v1132_v13, %v1131_v27  ;;  %v1138_v49 = vsel %vm923_vm2, %v4181_v6, 0.0  ;;  %3656 = vpow2.f32 %v1072_v9 }
 0x298   :  { %v1078_v55 = vmul.f32 1.442695, %v1027_v62  ;;  %v1080_v20 = vmul.f32 1.442695, %v1028_v48  ;;  %v1082_v23 = vmul.f32 1.442695, %v1029_v47  ;;  %v1007_v0 = vmax.f32 %v1005_v29, %v1006_v12 }
 0x299   :  { %3658 = vrcp.f32 %v1124_v60  ;;  %v1135_v25 = vadd.f32 %v1134_v16, %v1133_v18  ;;  %v1084_v7 = vmul.f32 1.442695, %v1030_v5  ;;  %v1086_v21 = vmul.f32 1.442695, %v1031_v35 }
 0x29a   :  { %3660 = vpow2.f32 %v1074_v14  ;;  %v1032_v38 = vsub.f32 %v4065_v1, %v1007_v0  ;;  %v1033_v44 = vsub.f32 %v4061_v57, %v1007_v0  ;;  %v1034_v19 = vsub.f32 %v4077_v11, %v1007_v0  ;;  %v4199_v57 = vpop.permute.xlu1 %1722  ;;  %v4201_v11 = vpop.trf.xlu0 }
 0x29b   :  { %3662 = vpow2.f32 %v1076_v53  ;;  %v1137_v28 = vadd.f32 %v1136_v17, %v1135_v25  ;;  %v1035_v45 = vsub.f32 %v4073_v2, %v1007_v0  ;;  %v1036_v52 = vsub.f32 %v4089_v26, %v1007_v0 }
 0x29c   :  { %3664 = vpow2.f32 %v1078_v55  ;;  %v1037_v29 = vsub.f32 %v4087_v24, %v1007_v0  ;;  %v1038_v62 = vsub.f32 %v4103_v56, %v1007_v0  ;;  %v1039_v63 = vsub.f32 %v4097_v50, %v1007_v0 }
 0x29d   :  { %3666 = vpow2.f32 %v1080_v20  ;;  %v1139_v48 = vadd.f32 %v1138_v49, %v1137_v28  ;;  %v1088_v1 = vmul.f32 1.442695, %v1032_v38  ;;  %v1090_v47 = vmul.f32 1.442695, %v1033_v44 }
 0x29e   :  { %3668 = vpow2.f32 %v1082_v23  ;;  %v1092_v12 = vmul.f32 1.442695, %v1034_v19  ;;  %v1094_v26 = vmul.f32 1.442695, %v1035_v45  ;;  %v1096_v56 = vmul.f32 1.442695, %v1036_v52  ;;  %v4213_v16 = vpop.permute.xlu1 %1891  ;;  %v4215_v17 = vpop.trf.xlu0 }
 0x29f   :  { %3670 = vpow2.f32 %v1084_v7  ;;  %v1140_v2 = vrot.slane %v1139_v48, 4  ;;  %v1098_v5 = vmul.f32 1.442695, %v1037_v29  ;;  %v1100_v35 = vmul.f32 1.442695, %v1038_v62 }
 0x2a0   :  { %3672 = vpow2.f32 %v1086_v21  ;;  %v1102_v18 = vmul.f32 1.442695, %v1039_v63 }
 0x2a1   :  { %3674 = vpow2.f32 %v1088_v1  ;;  %v4203_v8 = vpop.eup %3656  ;;  %v1141_v24 = vadd.f32 %v1140_v2, %v1139_v48 }
 0x2a2   :  { %3676 = vpow2.f32 %v1090_v47  ;;  %v1146_v4 = vsel %vm923_vm2, %v4203_v8, 0.0  ;;  %v4242_v1 = vpop.permute.xlu1 %2060  ;;  %v4244_v47 = vpop.trf.xlu0 }
 0x2a3   :  { %v3659_v50 = vpop.eup %3658  ;;  %3678 = vpow2.f32 %v1092_v12  ;;  %v1142_v13 = vrot.slane %v1141_v24, 2 }
 0x2a4   :  { %v4207_v27 = vpop.eup %3660  ;;  %3680 = vpow2.f32 %v1094_v26  ;;  %v1192_v9 = vmul.f32 %v3659_v50, %v4099_v51  ;;  %v1193_v14 = vmul.f32 %v3659_v50, %v4105_v61  ;;  %v1194_v49 = vmul.f32 %v3659_v50, %v4113_v41 }
 0x2a5   :  { %v4211_v60 = vpop.eup %3662  ;;  %v1147_v53 = vsel %vm923_vm2, %v4207_v27, 0.0  ;;  %v1195_v55 = vmul.f32 %v3659_v50, %v4117_v59  ;;  %v1143_v23 = vadd.f32 %v1142_v13, %v1141_v24  ;;  %3682 = vpow2.f32 %v1096_v56 }
 0x2a6   :  { %v4221_v20 = vpop.eup %3664  ;;  %v1148_v51 = vadd.f32 %v1147_v53, %v1146_v4  ;;  %v1149_v0 = vsel %vm923_vm2, %v4211_v60, 0.0  ;;  %3684 = vpow2.f32 %v1098_v5  ;;  %v3502_v25 = vpack.c.bf16 %v1193_v14, %v1192_v9 }
 0x2a7   :  { %v4223_v61 = vpop.eup %3666  ;;  %v3505_v7 = vpack.c.bf16 %v1195_v55, %v1194_v49  ;;  %v1144_v38 = vrot.slane %v1143_v23, 1  ;;  %v1151_v41 = vsel %vm923_vm2, %v4221_v20, 0.0  ;;  %3686 = vpow2.f32 %v1100_v35  ;;  %v4261_v35 = vpop.trf.xlu1 }
 0x2a8   :  { %v4227_v21 = vpop.eup %3668  ;;  %v1150_v44 = vadd.f32 %v1149_v0, %v1148_v51  ;;  %3688 = vpow2.f32 %v1102_v18  ;;  %3503 = vmatpush3.bf16.msra.mxu0 %v3502_v25  ;;  %v1196_v19 = vmul.f32 %v3659_v50, %v4124_v15  ;;  %v1197_v28 = vmul.f32 %v3659_v50, %v4135_v10  ;;  %v4271_v55 = vpop.trf.xlu0 }
 0x2a9   :  { %v4231_v59 = vpop.eup %3670  ;;  %v1198_v45 = vmul.f32 %v3659_v50, %v4139_v42  ;;  %v1145_v29 = vadd.f32 %v1144_v38, %v1143_v23  ;;  %3504 = vmatprep.subr.bf16.mxu0 %v3770_v40  ;;  %v1199_v63 = vmul.f32 %v3659_v50, %v4145_v58  ;;  %v1153_v15 = vsel %vm923_vm2, %v4223_v61, 0.0 }
 0x2aa   :  { %v4236_v52 = vpop.eup %3672  ;;  %v1152_v62 = vadd.f32 %v1151_v41, %v1150_v44  ;;  %v3508_v10 = vpack.c.bf16 %v1197_v28, %v1196_v19  ;;  %v1155_v58 = vsel %vm923_vm2, %v4227_v21, 0.0  ;;  %v1157_v13 = vsel %vm923_vm2, %v4231_v59, 0.0 }
 0x2ab   :  { %v4240_v48 = vpop.eup %3674  ;;  %3690 = vrcp.f32 %v1145_v29  ;;  %v3511_v26 = vpack.c.bf16 %v1199_v63, %v1198_v45  ;;  %v1159_v23 = vsel %vm923_vm2, %v4236_v52, 0.0  ;;  %v4284_v28 = vpop.trf.xlu1 }
 0x2ac   :  { %v4248_v12 = vpop.eup %3676  ;;  %v1154_v42 = vadd.f32 %v1153_v15, %v1152_v62  ;;  %v1167_v2 = vsel %vm923_vm2, %v4240_v48, 0.0  ;;  %3506 = vmatpush3.bf16.msra.mxu0 %v3505_v7 }
 0x2ad   :  { %v4252_v24 = vpop.eup %3678  ;;  %v1168_v56 = vsel %vm923_vm2, %v4248_v12, 0.0  ;;  %3507 = vmatprep.subr.bf16.mxu0 %v3770_v40 }
 0x2ae   :  { %v4258_v50 = vpop.eup %3680  ;;  %v1156_v4 = vadd.f32 %v1155_v58, %v1154_v42  ;;  %v1169_v5 = vadd.f32 %v1168_v56, %v1167_v2  ;;  %v1170_v9 = vsel %vm923_vm2, %v4252_v24, 0.0  ;;  %v4293_v42 = vpop.trf.xlu0 }
 0x2af   :  { %v4267_v14 = vpop.eup %3682  ;;  %v1172_v51 = vsel %vm923_vm2, %v4258_v50, 0.0 }
 0x2b0   :  { %v1158_v53 = vadd.f32 %v1157_v13, %v1156_v4  ;;  %v1171_v18 = vadd.f32 %v1170_v9, %v1169_v5  ;;  %v4269_v49 = vpop.eup %3684  ;;  %3509 = vmatpush3.bf16.msra.mxu0 %v3508_v10  ;;  %v1174_v44 = vsel %vm923_vm2, %v4267_v14, 0.0 }
 0x2b1   :  { %v4277_v0 = vpop.eup %3686  ;;  %3510 = vmatprep.subr.bf16.mxu0 %v3770_v40  ;;  %v1176_v45 = vsel %vm923_vm2, %v4269_v49, 0.0 }
 0x2b2   :  { %v1160_v25 = vadd.f32 %v1159_v23, %v1158_v53  ;;  %v1173_v7 = vadd.f32 %v1172_v51, %v1171_v18  ;;  %v4280_v38 = vpop.eup %3688  ;;  %v1178_v15 = vsel %vm923_vm2, %v4277_v0, 0.0  ;;  %v4307_v51 = vpop.trf.xlu1 }
 0x2b3   :  { %v1180_v10 = vsel %vm923_vm2, %v4280_v38, 0.0 }
 0x2b4   :  { %v1161_v41 = vrot.slane %v1160_v25, 4  ;;  %v1175_v19 = vadd.f32 %v1174_v44, %v1173_v7  ;;  %3512 = vmatpush3.bf16.msra.mxu0 %v3511_v26 }
 0x2b5   :  { %v3691_v29 = vpop.eup %3690  ;;  %3525 = vmatprep.subr.bf16.mxu0 %v3770_v40 }
 0x2b6   :  { %v1162_v62 = vadd.f32 %v1161_v41, %v1160_v25  ;;  %v1177_v63 = vadd.f32 %v1176_v45, %v1175_v19  ;;  %v1200_v2 = vmul.f32 %v3691_v29, %v4151_v22  ;;  %v1201_v58 = vmul.f32 %v3691_v29, %v4153_v3  ;;  %v4313_v44 = vpop.trf.xlu1 }
 0x2b7   :  { %v1202_v56 = vmul.f32 %v3691_v29, %v4157_v33  ;;  %v1203_v26 = vmul.f32 %v3691_v29, %v4161_v37  ;;  %3288 = vmatmul.mubr.msk.f32.vlgmr.msra.gmra.mrb[20].mxu0 %vm923_vm2, %v3951_v32  ;;  %v1204_v13 = vmul.f32 %v3691_v29, %v4165_v31  ;;  %v1205_v9 = vmul.f32 %v3691_v29, %v4171_v43  ;;  %v4310_v43 = vpop.trf.xlu0 }
 0x2b8   :  { %v1163_v4 = vrot.slane %v1162_v62, 2  ;;  %v1179_v5 = vadd.f32 %v1178_v15, %v1177_v63  ;;  %v3514_v53 = vpack.c.bf16 %v1201_v58, %v1200_v2  ;;  %v1206_v23 = vmul.f32 %v3691_v29, %v4175_v54  ;;  %3325 = vmatprep.mubr.msk.f32.mxu0 %vm3771_vm3, %v3772_v46 }
 0x2b9   :  { %v3517_v18 = vpack.c.bf16 %v1203_v26, %v1202_v56  ;;  %v1207_v22 = vmul.f32 %v3691_v29, %v4181_v6  ;;  %v3520_v37 = vpack.c.bf16 %v1205_v9, %v1204_v13 }
 0x2ba   :  { %v1164_v3 = vadd.f32 %v1163_v4, %v1162_v62  ;;  %v1181_v33 = vadd.f32 %v1180_v10, %v1179_v5  ;;  %3515 = vmatpush3.bf16.msra.mxu1 %v3514_v53  ;;  %v4318_v62 = vpop.trf.xlu1 }
 0x2bb   :  { %v3523_v32 = vpack.c.bf16 %v1207_v22, %v1206_v23  ;;  %3516 = vmatprep.subr.bf16.mxu1 %v3770_v40  ;;  %v4315_v19 = vpop.trf.xlu0 }
 0x2bc   :  { %v1165_v25 = vrot.slane %v1164_v3, 1  ;;  %v1182_v31 = vrot.slane %v1181_v33, 4 }
 0x2be   :  { %v1166_v7 = vadd.f32 %v1165_v25, %v1164_v3  ;;  %v1183_v54 = vadd.f32 %v1182_v31, %v1181_v33  ;;  %3518 = vmatpush3.bf16.msra.mxu1 %v3517_v18 }
 0x2bf   :  { %3519 = vmatprep.subr.bf16.mxu1 %v3770_v40  ;;  %v4321_v63 = vpop.trf.xlu0 }
 0x2c0   :  { %3692 = vrcp.f32 %v1166_v7  ;;  %v1184_v6 = vrot.slane %v1183_v54, 2 }
 0x2c2   :  { %v1185_v41 = vadd.f32 %v1184_v6, %v1183_v54  ;;  %3521 = vmatpush3.bf16.msra.mxu1 %v3520_v37 }
 0x2c3   :  { %3522 = vmatprep.subr.bf16.mxu1 %v3770_v40 }
 0x2c4   :  { %v1186_v45 = vrot.slane %v1185_v41, 1 }
 0x2c6   :  { %v1187_v29 = vadd.f32 %v1186_v45, %v1185_v41  ;;  %3524 = vmatpush3.bf16.msra.mxu1 %v3523_v32 }
 0x2c7   :  { %3537 = vmatprep.subr.bf16.mxu1 %v3770_v40 }
 0x2c8   :  { %3694 = vrcp.f32 %v1187_v29 }
 0x2c9   :  { %3307 = vmatmul.mubr.msk.f32.vlgmr.msra.gmra.mrb[24].mxu1 %vm923_vm2, %v3948_v30  ;;  %v4335_v30 = vpop.trf.xlu1 }
 0x2ca   :  { %v3693_v15 = vpop.eup %3692  ;;  %3344 = vmatprep.mubr.msk.f32.mxu1 %vm3771_vm3, %v3772_v46 }
 0x2cb   :  { %v1208_v10 = vmul.f32 %v3693_v15, %v4203_v8  ;;  %v1209_v2 = vmul.f32 %v3693_v15, %v4207_v27  ;;  %v1210_v58 = vmul.f32 %v3693_v15, %v4211_v60  ;;  %v1211_v56 = vmul.f32 %v3693_v15, %v4221_v20  ;;  %v1874_v60 = vpop.trf.xlu0 }
 0x2cc   :  { %v1212_v26 = vmul.f32 %v3693_v15, %v4223_v61  ;;  %v1213_v4 = vmul.f32 %v3693_v15, %v4227_v21  ;;  %v1214_v5 = vmul.f32 %v3693_v15, %v4231_v59  ;;  %v1215_v13 = vmul.f32 %v3693_v15, %v4236_v52 }
 0x2cd   :  { %v3526_v8 = vpack.c.bf16 %v1209_v2, %v1208_v10  ;;  %v3529_v9 = vpack.c.bf16 %v1211_v56, %v1210_v58  ;;  %v4338_v18 = vpop.trf.xlu1 }
 0x2ce   :  { %v3532_v27 = vpack.c.bf16 %v1213_v4, %v1212_v26  ;;  %v3535_v53 = vpack.c.bf16 %v1215_v13, %v1214_v5 }
 0x2cf   :  { %3527 = vmatpush3.bf16.msra.mxu0 %v3526_v8  ;;  %v1875_v37 = vpop.trf.xlu0 }
 0x2d0   :  { %3528 = vmatprep.subr.bf16.mxu0 %v3770_v40 }
 0x2d2   :  { %v3695_v20 = vpop.eup %3694 }
 0x2d3   :  { %v1216_v61 = vmul.f32 %v3695_v20, %v4240_v48  ;;  %v1217_v21 = vmul.f32 %v3695_v20, %v4248_v12  ;;  %3530 = vmatpush3.bf16.msra.mxu0 %v3529_v9  ;;  %v1218_v59 = vmul.f32 %v3695_v20, %v4252_v24  ;;  %v1219_v52 = vmul.f32 %v3695_v20, %v4258_v50  ;;  %v1712_v24 = vpop.trf.xlu1  ;;  %v1876_v50 = vpop.trf.xlu0 }
 0x2d4   :  { %3531 = vmatprep.subr.bf16.mxu0 %v3770_v40  ;;  %v1220_v23 = vmul.f32 %v3695_v20, %v4267_v14  ;;  %v1221_v22 = vmul.f32 %v3695_v20, %v4269_v49  ;;  %v1222_v3 = vmul.f32 %v3695_v20, %v4277_v0  ;;  %v1223_v33 = vmul.f32 %v3695_v20, %v4280_v38 }
 0x2d5   :  { %v3538_v32 = vpack.c.bf16 %v1217_v21, %v1216_v61  ;;  %v3541_v48 = vpack.c.bf16 %v1219_v52, %v1218_v59 }
 0x2d6   :  { %v3544_v25 = vpack.c.bf16 %v1221_v22, %v1220_v23  ;;  %v3547_v12 = vpack.c.bf16 %v1223_v33, %v1222_v3 }
 0x2d7   :  { %3539 = vmatpush3.bf16.msra.mxu1 %v3538_v32  ;;  %3533 = vmatpush3.bf16.msra.mxu0 %v3532_v27  ;;  %v2043_v14 = vpop.trf.xlu1  ;;  %v1877_v49 = vpop.trf.xlu0 }
 0x2d8   :  { %3540 = vmatprep.subr.bf16.mxu1 %v3770_v40  ;;  %3534 = vmatprep.subr.bf16.mxu0 %v3770_v40 }
 0x2db   :  { %3542 = vmatpush3.bf16.msra.mxu1 %v3541_v48  ;;  %3536 = vmatpush3.bf16.msra.mxu0 %v3535_v53 }
 0x2dc   :  { %3543 = vmatprep.subr.bf16.mxu1 %v3770_v40  ;;  %3347 = vmatprep.subr.mxu0 %v3956_v36 }
 0x2de   :  { %3326 = vmatmul.mubr.msk.f32.vlgmr.msra.gmra.mrb[22].mxu0 %vm923_vm2, %v3963_v39  ;;  %v2044_v39 = vpop.trf.xlu1 }
 0x2df   :  { %3545 = vmatpush3.bf16.msra.mxu1 %v3544_v25  ;;  %3348 = vmatpush3.msra.mxu0 %v3956_v36 }
 0x2e0   :  { %3546 = vmatprep.subr.bf16.mxu1 %v3770_v40  ;;  %3349 = vmatprep.mubr.msk.f32.mxu0 %vm310_vm1, %v4201_v11  ;;  %v1878_v11 = vpop.trf.xlu0 }
 0x2e1   :  { %3375 = vmatprep.subr.mxu0 %v4213_v16 }
 0x2e2   :  { %3350 = vmatmul.mubr.msk.f32.vlgmr.msra.gmra.mrb[24].mxu0 %vm310_vm1, %v4215_v17 }
 0x2e3   :  { %3548 = vmatpush3.bf16.msra.mxu1 %v3547_v12  ;;  %3376 = vmatpush3.msra.mxu0 %v4213_v16 }
 0x2e4   :  { %3605 = vmatprep.subr.mxu1 %v3956_v36  ;;  %3352 = vmatprep.mubr.msk.f32.mxu0 %vm310_vm1, %v4244_v47 }
 0x2e5   :  { %3549 = vmatprep.subr.bf16.mxu0 %v3770_v40 }
 0x2e6   :  { %3345 = vmatmul.mubr.msk.f32.vlgmr.msra.gmra.mrb[26].mxu1 %vm923_vm2, %v3954_v34  ;;  %3353 = vmatmul.mubr.msk.f32.gmra.mrb[26].mxu0 %vm310_vm1, %v4271_v55  ;;  %v2045_v34 = vpop.trf.xlu1 }
 0x2e7   :  { %3606 = vmatpush3.msra.mxu1 %v3956_v36  ;;  %3358 = vmatprep.mubr.msk.f32.mxu1 %vm310_vm1, %v4315_v19  ;;  %v1879_v36 = vpop.trf.xlu0 }
 0x2e8   :  { %3361 = vmatprep.subr.mxu1 %v4199_v57  ;;  %3355 = vmatprep.mubr.msk.f32.mxu0 %vm310_vm1, %v4293_v42 }
 0x2ea   :  { %3359 = vmatmul.mubr.msk.f32.vlgmr.msra.gmra.mrb[28].mxu1 %vm310_vm1, %v4321_v63  ;;  %3356 = vmatmul.mubr.msk.f32.gmra.mrb[28].mxu0 %vm310_vm1, %v4310_v43 }
 0x2eb   :  { %3362 = vmatpush3.msra.mxu1 %v4199_v57  ;;  %3363 = vmatprep.mubr.msk.f32.mxu1 %vm310_vm1, %v4261_v35  ;;  %v2046_v57 = vpop.trf.xlu1  ;;  %v1880_v16 = vpop.trf.xlu0 }
 0x2ec   :  { %3389 = vmatprep.subr.mxu1 %v4242_v1  ;;  %3377 = vmatprep.mubr.msk.f32.mxu0 %vm310_vm1, %v1874_v60 }
 0x2ee   :  { %3364 = vmatmul.mubr.msk.f32.vlgmr.msra.gmra.mrb[30].mxu1 %vm310_vm1, %v4284_v28  ;;  %3378 = vmatmul.mubr.msk.f32.vlgmr.msra.gmra.mrb[30].mxu0 %vm310_vm1, %v1875_v37 }
 0x2ef   :  { %3390 = vmatpush3.msra.mxu1 %v4242_v1  ;;  %3366 = vmatprep.mubr.msk.f32.mxu1 %vm310_vm1, %v4307_v51  ;;  %v2047_v17 = vpop.trf.xlu1  ;;  %v1881_v1 = vpop.trf.xlu0 }
 0x2f0   :  { %3380 = vmatprep.mubr.msk.f32.mxu0 %vm310_vm1, %v1876_v50  ;;  %3561 = vmatprep.subr.bf16.mxu1 %v3770_v40 }
 0x2f2   :  { %3367 = vmatmul.mubr.msk.f32.gmra.mrb[32].mxu1 %vm310_vm1, %v4313_v44  ;;  %3381 = vmatmul.mubr.msk.f32.gmra.mrb[32].mxu0 %vm310_vm1, %v1877_v49 }
 0x2f3   :  { %3369 = vmatprep.mubr.msk.f32.mxu1 %vm310_vm1, %v4318_v62  ;;  %3383 = vmatprep.mubr.msk.f32.mxu0 %vm310_vm1, %v1878_v11  ;;  %v2048_v47 = vpop.trf.xlu1 }
 0x2f6   :  { %3370 = vmatmul.mubr.msk.f32.gmra.mrb[34].mxu1 %vm310_vm1, %v4335_v30  ;;  %3384 = vmatmul.mubr.msk.f32.gmra.mrb[34].mxu0 %vm310_vm1, %v1879_v36 }
 0x2f7   :  { %3372 = vmatprep.mubr.msk.f32.mxu1 %vm310_vm1, %v4338_v18  ;;  %3386 = vmatprep.mubr.msk.f32.mxu0 %vm310_vm1, %v1880_v16  ;;  %v2049_v35 = vpop.trf.xlu1 }
 0x2fa   :  { %3373 = vmatmul.mubr.msk.f32.gmra.mrb[36].mxu1 %vm310_vm1, %v1712_v24  ;;  %3387 = vmatmul.mubr.msk.f32.gmra.mrb[36].mxu0 %vm310_vm1, %v1881_v1 }
 0x2fb   :  { %3391 = vmatprep.mubr.msk.f32.mxu1 %vm310_vm1, %v2043_v14  ;;  %3419 = vmatprep.mubr.msk.f32.mxu0 %vm3771_vm3, %v3772_v46  ;;  %v2050_v55 = vpop.trf.xlu1 }
 0x2fe   :  { %3392 = vmatmul.mubr.msk.f32.vlgmr.msra.gmra.mrb[38].mxu1 %vm310_vm1, %v2044_v39 }
 0x2ff   :  { %3394 = vmatprep.mubr.msk.f32.mxu1 %vm310_vm1, %v2045_v34 }
 0x302   :  { %3395 = vmatmul.mubr.msk.f32.gmra.mrb[40].mxu1 %vm310_vm1, %v2046_v57 }
 0x303   :  { %3397 = vmatprep.mubr.msk.f32.mxu1 %vm310_vm1, %v2047_v17 }
 0x306   :  { %3398 = vmatmul.mubr.msk.f32.gmra.mrb[42].mxu1 %vm310_vm1, %v2048_v47 }
 0x307   :  { %3400 = vmatprep.mubr.msk.f32.mxu1 %vm310_vm1, %v2049_v35 }
 0x30a   :  { %3401 = vmatmul.mubr.msk.f32.gmra.mrb[44].mxu1 %vm310_vm1, %v2050_v55 }
 0x30b   :  { %3438 = vmatprep.mubr.msk.f32.mxu1 %vm3771_vm3, %v3772_v46 }
 0x38a   :  { %v4420_v0 = vpop.f32.mrb[20].mxu0 }
 0x38b   :  { %v3289_v38 = vpop.f32.mrb[21].mxu0 }
 0x39c   :  { %v4422_v28 = vpop.f32.mrb[24].mxu1 }
 0x39d   :  { %v3308_v42 = vpop.f32.mrb[25].mxu1 }
 0x3b1   :  { %v4424_v51 = vpop.f32.mrb[22].mxu0 }
 0x3b2   :  { %v3327_v31 = vpop.f32.mrb[23].mxu0 }
 0x3b5   :  { %v4426_v43 = vpop.f32.mrb[24].mxu0 }
 0x3b6   :  { %v2193_v7 = vsel %vm923_vm2, %v4426_v43, -inf  ;;  %v4430_v54 = vpop.f32.mrb[25].mxu0 }
 0x3b7   :  { %v2192_v6 = vsel %vm923_vm2, %v4430_v54, -inf }
 0x3b8   :  { %v2194_v44 = vmax.f32 %v2192_v6, %v2193_v7 }
 0x3b9   :  { %v4434_v41 = vpop.f32.mrb[26].mxu1  ;;  %v4436_v19 = vpop.f32.mrb[26].mxu0 }
 0x3ba   :  { %v3346_v45 = vpop.f32.mrb[27].mxu1  ;;  %v4438_v29 = vpop.f32.mrb[27].mxu0  ;;  %v2197_v10 = vsel %vm923_vm2, %v4436_v19, -inf }
 0x3bb   :  { %v2195_v62 = vsel %vm923_vm2, %v4438_v29, -inf }
 0x3bc   :  { %v2196_v63 = vmax.f32 %v2194_v44, %v2195_v62 }
 0x3bd   :  { %v4442_v15 = vpop.f32.mrb[28].mxu1  ;;  %v4446_v2 = vpop.f32.mrb[28].mxu0 }
 0x3be   :  { %v4448_v58 = vpop.f32.mrb[29].mxu1  ;;  %v4450_v56 = vpop.f32.mrb[29].mxu0  ;;  %v2198_v26 = vmax.f32 %v2196_v63, %v2197_v10  ;;  %v2201_v30 = vsel %vm923_vm2, %v4446_v2, -inf  ;;  %v2205_v22 = vsel %vm923_vm2, %v4442_v15, -inf }
 0x3bf   :  { %v2199_v4 = vsel %vm923_vm2, %v4450_v56, -inf  ;;  %v2203_v18 = vsel %vm923_vm2, %v4448_v58, -inf }
 0x3c0   :  { %v2200_v5 = vmax.f32 %v2198_v26, %v2199_v4 }
 0x3c1   :  { %v4454_v13 = vpop.f32.mrb[30].mxu1  ;;  %v4458_v8 = vpop.f32.mrb[30].mxu0 }
 0x3c2   :  { %v2214_v9 = vsel %vm923_vm2, %v4454_v13, -inf  ;;  %v4462_v27 = vpop.f32.mrb[31].mxu1  ;;  %v2202_v53 = vmax.f32 %v2200_v5, %v2201_v30  ;;  %v2235_v60 = vsel %vm923_vm2, %v4458_v8, -inf  ;;  %v4466_v20 = vpop.f32.mrb[31].mxu0 }
 0x3c3   :  { %v2213_v61 = vsel %vm923_vm2, %v4462_v27, -inf  ;;  %v2234_v21 = vsel %vm923_vm2, %v4466_v20, -inf }
 0x3c4   :  { %v2215_v59 = vmax.f32 %v2213_v61, %v2214_v9  ;;  %v2204_v52 = vmax.f32 %v2202_v53, %v2203_v18  ;;  %v2236_v23 = vmax.f32 %v2234_v21, %v2235_v60 }
 0x3c5   :  { %v4476_v3 = vpop.f32.mrb[32].mxu1  ;;  %v4478_v33 = vpop.f32.mrb[32].mxu0 }
 0x3c6   :  { %v2206_v37 = vmax.f32 %v2204_v52, %v2205_v22  ;;  %v4480_v32 = vpop.f32.mrb[33].mxu1  ;;  %v4482_v48 = vpop.f32.mrb[33].mxu0  ;;  %v2218_v49 = vsel %vm923_vm2, %v4476_v3, -inf  ;;  %v2239_v16 = vsel %vm923_vm2, %v4478_v33, -inf }
 0x3c7   :  { %v2216_v25 = vsel %vm923_vm2, %v4480_v32, -inf  ;;  %v2237_v12 = vsel %vm923_vm2, %v4482_v48, -inf }
 0x3c8   :  { %v2207_v24 = vrot.slane %v2206_v37, 4  ;;  %v2217_v50 = vmax.f32 %v2215_v59, %v2216_v25  ;;  %v2238_v14 = vmax.f32 %v2236_v23, %v2237_v12 }
 0x3c9   :  { %v4490_v39 = vpop.f32.mrb[34].mxu1  ;;  %v4492_v11 = vpop.f32.mrb[34].mxu0 }
 0x3ca   :  { %v2208_v34 = vmax.f32 %v2206_v37, %v2207_v24  ;;  %v4494_v36 = vpop.f32.mrb[35].mxu1  ;;  %v2219_v57 = vmax.f32 %v2217_v50, %v2218_v49  ;;  %v4498_v17 = vpop.f32.mrb[35].mxu0  ;;  %v2240_v47 = vmax.f32 %v2238_v14, %v2239_v16  ;;  %v2243_v42 = vsel %vm923_vm2, %v4492_v11, -inf }
 0x3cb   :  { %v2220_v1 = vsel %vm923_vm2, %v4494_v36, -inf  ;;  %v2241_v35 = vsel %vm923_vm2, %v4498_v17, -inf  ;;  %v2222_v31 = vsel %vm923_vm2, %v4490_v39, -inf }
 0x3cc   :  { %v2209_v55 = vrot.slane %v2208_v34, 2  ;;  %v2221_v38 = vmax.f32 %v2219_v57, %v2220_v1  ;;  %v2242_v6 = vmax.f32 %v2240_v47, %v2241_v35 }
 0x3cd   :  { %v4508_v7 = vpop.f32.mrb[36].mxu1  ;;  %v4510_v44 = vpop.f32.mrb[36].mxu0 }
 0x3ce   :  { %v2210_v45 = vmax.f32 %v2208_v34, %v2209_v55  ;;  %v4512_v62 = vpop.f32.mrb[37].mxu1  ;;  %v2223_v63 = vmax.f32 %v2221_v38, %v2222_v31  ;;  %v4514_v10 = vpop.f32.mrb[37].mxu0  ;;  %v2244_v4 = vmax.f32 %v2242_v6, %v2243_v42  ;;  %v2247_v53 = vsel %vm923_vm2, %v4510_v44, -inf }
 0x3cf   :  { %v2224_v26 = vsel %vm923_vm2, %v4512_v62, -inf  ;;  %v2245_v5 = vsel %vm923_vm2, %v4514_v10, -inf  ;;  %v2226_v60 = vsel %vm923_vm2, %v4508_v7, -inf }
 0x3d0   :  { %v2211_v30 = vrot.slane %v2210_v45, 1  ;;  %v2225_v9 = vmax.f32 %v2223_v63, %v2224_v26  ;;  %v2246_v61 = vmax.f32 %v2244_v4, %v2245_v5 }
 0x3d1   :  { %v4524_v18 = vpop.f32.mrb[38].mxu1 }
 0x3d2   :  { %v2212_v21 = vmax.f32 %v2210_v45, %v2211_v30  ;;  %v2227_v59 = vmax.f32 %v2225_v9, %v2226_v60  ;;  %v4526_v52 = vpop.f32.mrb[39].mxu1  ;;  %v2256_v23 = vsel %vm923_vm2, %v4524_v18, -inf  ;;  %v2248_v37 = vmax.f32 %v2246_v61, %v2247_v53 }
 0x3d3   :  { %v2255_v22 = vsel %vm923_vm2, %v4526_v52, -inf }
 0x3d4   :  { %v2276_v25 = vsub.f32 %v4430_v54, %v2212_v21  ;;  %v2277_v12 = vsub.f32 %v4426_v43, %v2212_v21  ;;  %v2278_v24 = vsub.f32 %v4438_v29, %v2212_v21  ;;  %v2279_v50 = vsub.f32 %v4436_v19, %v2212_v21 }
 0x3d5   :  { %v2280_v14 = vsub.f32 %v4450_v56, %v2212_v21  ;;  %v2281_v49 = vsub.f32 %v4446_v2, %v2212_v21  ;;  %v2282_v34 = vsub.f32 %v4448_v58, %v2212_v21  ;;  %v2283_v57 = vsub.f32 %v4442_v15, %v2212_v21  ;;  %v4540_v16 = vpop.f32.mrb[40].mxu1 }
 0x3d6   :  { %v2308_v1 = vmul.f32 1.442695, %v2276_v25  ;;  %v2310_v47 = vmul.f32 1.442695, %v2277_v12  ;;  %v2312_v35 = vmul.f32 1.442695, %v2278_v24  ;;  %v2257_v54 = vmax.f32 %v2255_v22, %v2256_v23 }
 0x3d7   :  { %v2314_v55 = vmul.f32 1.442695, %v2279_v50  ;;  %v2316_v43 = vmul.f32 1.442695, %v2280_v14  ;;  %v2228_v29 = vrot.slane %v2227_v59, 4  ;;  %v4542_v38 = vpop.f32.mrb[41].mxu1 }
 0x3d8   :  { %3696 = vpow2.f32 %v2308_v1  ;;  %v2318_v19 = vmul.f32 1.442695, %v2281_v49  ;;  %v2249_v56 = vrot.slane %v2248_v37, 4  ;;  %v2258_v2 = vsel %vm923_vm2, %v4542_v38, -inf }
 0x3d9   :  { %3698 = vpow2.f32 %v2310_v47  ;;  %v4546_v58 = vpop.f32.mrb[42].mxu1  ;;  %v2320_v15 = vmul.f32 1.442695, %v2282_v34  ;;  %v2229_v42 = vmax.f32 %v2227_v59, %v2228_v29  ;;  %v2259_v31 = vmax.f32 %v2257_v54, %v2258_v2 }
 0x3da   :  { %3700 = vpow2.f32 %v2312_v35  ;;  %v4548_v6 = vpop.f32.mrb[43].mxu1  ;;  %v2260_v45 = vsel %vm923_vm2, %v4540_v16, -inf  ;;  %v2250_v63 = vmax.f32 %v2248_v37, %v2249_v56  ;;  %v2322_v21 = vmul.f32 1.442695, %v2283_v57 }
 0x3db   :  { %3702 = vpow2.f32 %v2314_v55  ;;  %v2262_v26 = vsel %vm923_vm2, %v4548_v6, -inf  ;;  %v2230_v4 = vrot.slane %v2229_v42, 2  ;;  %v2261_v5 = vmax.f32 %v2259_v31, %v2260_v45 }
 0x3dc   :  { %3704 = vpow2.f32 %v2316_v43  ;;  %v2251_v30 = vrot.slane %v2250_v63, 2  ;;  %v2264_v23 = vsel %vm923_vm2, %v4546_v58, -inf }
 0x3dd   :  { %3706 = vpow2.f32 %v2318_v19  ;;  %v4554_v9 = vpop.f32.mrb[44].mxu1  ;;  %v2231_v53 = vmax.f32 %v2229_v42, %v2230_v4  ;;  %v2263_v60 = vmax.f32 %v2261_v5, %v2262_v26 }
 0x3de   :  { %3708 = vpow2.f32 %v2320_v15  ;;  %v4556_v61 = vpop.f32.mrb[45].mxu1  ;;  %v2252_v59 = vmax.f32 %v2250_v63, %v2251_v30 }
 0x3df   :  { %v2266_v22 = vsel %vm923_vm2, %v4556_v61, -inf  ;;  %v2232_v37 = vrot.slane %v2231_v53, 1  ;;  %v2265_v25 = vmax.f32 %v2263_v60, %v2264_v23  ;;  %3710 = vpow2.f32 %v2322_v21 }
 0x3e0   :  { %v2253_v12 = vrot.slane %v2252_v59, 1 }
 0x3e1   :  { %v2233_v50 = vmax.f32 %v2231_v53, %v2232_v37  ;;  %v4564_v14 = vmax.f32 %v2265_v25, %v2266_v22 }
 0x3e2   :  { %v4562_v24 = vpop.eup %3696  ;;  %v4570_v57 = vmax.f32 %v2252_v59, %v2253_v12 }
 0x3e3   :  { %v4566_v49 = vpop.eup %3698  ;;  %v2372_v34 = vsel %vm923_vm2, %v4562_v24, 0.0  ;;  %v2284_v35 = vsub.f32 %v4462_v27, %v2233_v50  ;;  %v2285_v54 = vsub.f32 %v4454_v13, %v2233_v50  ;;  %v2286_v55 = vsub.f32 %v4480_v32, %v2233_v50 }
 0x3e4   :  { %v4572_v1 = vpop.eup %3700  ;;  %v2373_v47 = vsel %vm923_vm2, %v4566_v49, 0.0  ;;  %v2287_v19 = vsub.f32 %v4476_v3, %v2233_v50  ;;  %v2288_v56 = vsub.f32 %v4494_v36, %v2233_v50  ;;  %v2289_v42 = vsub.f32 %v4490_v39, %v2233_v50 }
 0x3e5   :  { %v4579_v43 = vpop.eup %3702  ;;  %v2374_v29 = vadd.f32 %v2373_v47, %v2372_v34  ;;  %v2375_v15 = vsel %vm923_vm2, %v4572_v1, 0.0  ;;  %v2290_v27 = vsub.f32 %v4512_v62, %v2233_v50  ;;  %v2291_v13 = vsub.f32 %v4508_v7, %v2233_v50 }
 0x3e6   :  { %v4583_v2 = vpop.eup %3704  ;;  %v2377_v45 = vsel %vm923_vm2, %v4579_v43, 0.0  ;;  %v2324_v3 = vmul.f32 1.442695, %v2284_v35  ;;  %v2326_v63 = vmul.f32 1.442695, %v2285_v54  ;;  %v2292_v39 = vsub.f32 %v4466_v20, %v4570_v57 }
 0x3e7   :  { %v4590_v31 = vpop.eup %3706  ;;  %v2376_v32 = vadd.f32 %v2375_v15, %v2374_v29  ;;  %v2379_v26 = vsel %vm923_vm2, %v4583_v2, 0.0  ;;  %v2328_v4 = vmul.f32 1.442695, %v2286_v55  ;;  %v2330_v5 = vmul.f32 1.442695, %v2287_v19 }
 0x3e8   :  { %v4594_v36 = vpop.eup %3708  ;;  %v2381_v7 = vsel %vm923_vm2, %v4590_v31, 0.0  ;;  %3712 = vpow2.f32 %v2324_v3  ;;  %v2332_v30 = vmul.f32 1.442695, %v2288_v56  ;;  %v2334_v60 = vmul.f32 1.442695, %v2289_v42 }
 0x3e9   :  { %v2378_v62 = vadd.f32 %v2377_v45, %v2376_v32  ;;  %v2383_v53 = vsel %vm923_vm2, %v4594_v36, 0.0  ;;  %3714 = vpow2.f32 %v2326_v63  ;;  %v2336_v21 = vmul.f32 1.442695, %v2290_v27  ;;  %v4612_v12 = vpop.eup %3710 }
 0x3ea   :  { %3716 = vpow2.f32 %v2328_v4  ;;  %v2338_v23 = vmul.f32 1.442695, %v2291_v13  ;;  %v2293_v22 = vsub.f32 %v4458_v8, %v4570_v57  ;;  %v2294_v20 = vsub.f32 %v4482_v48, %v4570_v57 }
 0x3eb   :  { %v2380_v59 = vadd.f32 %v2379_v26, %v2378_v62  ;;  %3718 = vpow2.f32 %v2330_v5  ;;  %v2295_v37 = vsub.f32 %v4478_v33, %v4570_v57  ;;  %v2296_v25 = vsub.f32 %v4498_v17, %v4570_v57 }
 0x3ec   :  { %3720 = vpow2.f32 %v2332_v30  ;;  %v2297_v34 = vsub.f32 %v4492_v11, %v4570_v57  ;;  %v2298_v8 = vsub.f32 %v4514_v10, %v4570_v57  ;;  %v2299_v48 = vsub.f32 %v4510_v44, %v4570_v57 }
 0x3ed   :  { %v2382_v50 = vadd.f32 %v2381_v7, %v2380_v59  ;;  %3722 = vpow2.f32 %v2334_v60  ;;  %v2340_v47 = vmul.f32 1.442695, %v2292_v39  ;;  %v2342_v35 = vmul.f32 1.442695, %v2293_v22 }
 0x3ee   :  { %3724 = vpow2.f32 %v2336_v21  ;;  %v2344_v54 = vmul.f32 1.442695, %v2294_v20  ;;  %v2385_v17 = vsel %vm923_vm2, %v4612_v12, 0.0  ;;  %v2346_v55 = vmul.f32 1.442695, %v2295_v37 }
 0x3ef   :  { %v2384_v33 = vadd.f32 %v2383_v53, %v2382_v50  ;;  %3726 = vpow2.f32 %v2338_v23  ;;  %v2268_v11 = vsel %vm923_vm2, %v4554_v9, -inf  ;;  %v2348_v19 = vmul.f32 1.442695, %v2296_v25 }
 0x3f0   :  { %3728 = vpow2.f32 %v2340_v47  ;;  %v2269_v10 = vmax.f32 %v4564_v14, %v2268_v11  ;;  %v2350_v27 = vmul.f32 1.442695, %v2297_v34  ;;  %v2352_v26 = vmul.f32 1.442695, %v2298_v8 }
 0x3f1   :  { %v2386_v29 = vadd.f32 %v2385_v17, %v2384_v33  ;;  %3730 = vpow2.f32 %v2342_v35  ;;  %v2354_v53 = vmul.f32 1.442695, %v2299_v48 }
 0x3f2   :  { %v4625_v44 = vpop.eup %3712  ;;  %3732 = vpow2.f32 %v2344_v54  ;;  %v2270_v56 = vrot.slane %v2269_v10, 4 }
 0x3f3   :  { %v2387_v57 = vrot.slane %v2386_v29, 4  ;;  %v4627_v15 = vpop.eup %3714  ;;  %v2393_v42 = vsel %vm923_vm2, %v4625_v44, 0.0  ;;  %3734 = vpow2.f32 %v2346_v55 }
 0x3f4   :  { %v4631_v13 = vpop.eup %3716  ;;  %v2394_v14 = vsel %vm923_vm2, %v4627_v15, 0.0  ;;  %v2271_v45 = vmax.f32 %v2269_v10, %v2270_v56  ;;  %3736 = vpow2.f32 %v2348_v19 }
 0x3f5   :  { %v2388_v32 = vadd.f32 %v2387_v57, %v2386_v29  ;;  %v4635_v3 = vpop.eup %3718  ;;  %v2395_v63 = vadd.f32 %v2394_v14, %v2393_v42  ;;  %v2396_v39 = vsel %vm923_vm2, %v4631_v13, 0.0  ;;  %3738 = vpow2.f32 %v2350_v27 }
 0x3f6   :  { %v4637_v4 = vpop.eup %3720  ;;  %v2272_v62 = vrot.slane %v2271_v45, 2  ;;  %v2398_v59 = vsel %vm923_vm2, %v4635_v3, 0.0  ;;  %3740 = vpow2.f32 %v2352_v26 }
 0x3f7   :  { %v2389_v5 = vrot.slane %v2388_v32, 2  ;;  %v4641_v7 = vpop.eup %3722  ;;  %v2397_v30 = vadd.f32 %v2396_v39, %v2395_v63  ;;  %v2400_v50 = vsel %vm923_vm2, %v4637_v4, 0.0  ;;  %3742 = vpow2.f32 %v2354_v53 }
 0x3f8   :  { %v4643_v60 = vpop.eup %3724  ;;  %v2273_v23 = vmax.f32 %v2271_v45, %v2272_v62  ;;  %v2402_v54 = vsel %vm923_vm2, %v4641_v7, 0.0 }
 0x3f9   :  { %v2390_v21 = vadd.f32 %v2389_v5, %v2388_v32  ;;  %v4647_v22 = vpop.eup %3726  ;;  %v2399_v20 = vadd.f32 %v2398_v59, %v2397_v30  ;;  %v2404_v10 = vsel %vm923_vm2, %v4643_v60, 0.0 }
 0x3fa   :  { %v4649_v37 = vpop.eup %3728  ;;  %v2274_v34 = vrot.slane %v2273_v23, 1  ;;  %v2406_v14 = vsel %vm923_vm2, %v4647_v22, 0.0 }
 0x3fb   :  { %v2391_v25 = vrot.slane %v2390_v21, 1  ;;  %v4653_v8 = vpop.eup %3730  ;;  %v2401_v48 = vadd.f32 %v2400_v50, %v2399_v20  ;;  %v2414_v47 = vsel %vm923_vm2, %v4649_v37, 0.0 }
 0x3fc   :  { %v4657_v35 = vpop.eup %3732  ;;  %v2415_v17 = vsel %vm923_vm2, %v4653_v8, 0.0  ;;  %v2275_v55 = vmax.f32 %v2273_v23, %v2274_v34 }
 0x3fd   :  { %v2392_v33 = vadd.f32 %v2391_v25, %v2390_v21  ;;  %v4663_v11 = vpop.eup %3734  ;;  %v2403_v29 = vadd.f32 %v2402_v54, %v2401_v48  ;;  %v2416_v19 = vadd.f32 %v2415_v17, %v2414_v47  ;;  %v2417_v57 = vsel %vm923_vm2, %v4657_v35, 0.0 }
 0x3fe   :  { %v2300_v56 = vsub.f32 %v4526_v52, %v2275_v55  ;;  %v2301_v42 = vsub.f32 %v4524_v18, %v2275_v55  ;;  %v4671_v27 = vpop.eup %3736  ;;  %v2302_v63 = vsub.f32 %v4542_v38, %v2275_v55  ;;  %v2419_v26 = vsel %vm923_vm2, %v4663_v11, 0.0 }
 0x3ff   :  { %3744 = vrcp.f32 %v2392_v33  ;;  %v2405_v32 = vadd.f32 %v2404_v10, %v2403_v29  ;;  %v2418_v45 = vadd.f32 %v2417_v57, %v2416_v19  ;;  %v2303_v5 = vsub.f32 %v4540_v16, %v2275_v55  ;;  %v4681_v62 = vpop.eup %3738 }
 0x400   :  { %v2304_v39 = vsub.f32 %v4548_v6, %v2275_v55  ;;  %v2305_v52 = vsub.f32 %v4546_v58, %v2275_v55  ;;  %v2306_v53 = vsub.f32 %v4556_v61, %v2275_v55  ;;  %v2421_v21 = vsel %vm923_vm2, %v4671_v27, 0.0  ;;  %v4687_v20 = vpop.eup %3740 }
 0x401   :  { %v2407_v18 = vadd.f32 %v2406_v14, %v2405_v32  ;;  %v2420_v30 = vadd.f32 %v2419_v26, %v2418_v45  ;;  %v2307_v38 = vsub.f32 %v4554_v9, %v2275_v55  ;;  %v2356_v59 = vmul.f32 1.442695, %v2300_v56  ;;  %v4691_v34 = vpop.eup %3742 }
 0x402   :  { %v2358_v23 = vmul.f32 1.442695, %v2301_v42  ;;  %v2360_v6 = vmul.f32 1.442695, %v2302_v63  ;;  %v2362_v50 = vmul.f32 1.442695, %v2303_v5 }
 0x403   :  { %v2408_v16 = vrot.slane %v2407_v18, 4  ;;  %v2422_v25 = vadd.f32 %v2421_v21, %v2420_v30  ;;  %v2423_v58 = vsel %vm923_vm2, %v4681_v62, 0.0  ;;  %3746 = vpow2.f32 %v2356_v59 }
 0x404   :  { %3748 = vpow2.f32 %v2358_v23  ;;  %v2364_v47 = vmul.f32 1.442695, %v2304_v39  ;;  %v2425_v9 = vsel %vm923_vm2, %v4687_v20, 0.0  ;;  %v2366_v33 = vmul.f32 1.442695, %v2305_v52 }
 0x405   :  { %v2409_v61 = vadd.f32 %v2408_v16, %v2407_v18  ;;  %v2424_v48 = vadd.f32 %v2423_v58, %v2422_v25  ;;  %3750 = vpow2.f32 %v2360_v6  ;;  %v2368_v55 = vmul.f32 1.442695, %v2306_v53 }
 0x406   :  { %3752 = vpow2.f32 %v2362_v50  ;;  %v2427_v10 = vsel %vm923_vm2, %v4691_v34, 0.0  ;;  %v2370_v19 = vmul.f32 1.442695, %v2307_v38 }
 0x407   :  { %v2410_v54 = vrot.slane %v2409_v61, 2  ;;  %v2426_v17 = vadd.f32 %v2425_v9, %v2424_v48  ;;  %3754 = vpow2.f32 %v2364_v47 }
 0x408   :  { %3756 = vpow2.f32 %v2366_v33 }
 0x409   :  { %v3745_v29 = vpop.eup %3744  ;;  %v2411_v57 = vadd.f32 %v2410_v54, %v2409_v61  ;;  %v2428_v56 = vadd.f32 %v2427_v10, %v2426_v17  ;;  %3758 = vpow2.f32 %v2368_v55 }
 0x40a   :  { %v2460_v42 = vmul.f32 %v3745_v29, %v4562_v24  ;;  %v2461_v32 = vmul.f32 %v3745_v29, %v4566_v49  ;;  %v2462_v14 = vmul.f32 %v3745_v29, %v4572_v1  ;;  %v2463_v45 = vmul.f32 %v3745_v29, %v4579_v43 }
 0x40b   :  { %v2412_v63 = vrot.slane %v2411_v57, 1  ;;  %v2429_v26 = vrot.slane %v2428_v56, 4  ;;  %v2464_v5 = vmul.f32 %v3745_v29, %v4583_v2  ;;  %v2465_v18 = vmul.f32 %v3745_v29, %v4590_v31 }
 0x40c   :  { %v3550_v39 = vpack.c.bf16 %v2461_v32, %v2460_v42  ;;  %v3553_v52 = vpack.c.bf16 %v2463_v45, %v2462_v14  ;;  %v2466_v30 = vmul.f32 %v3745_v29, %v4594_v36  ;;  %v2467_v21 = vmul.f32 %v3745_v29, %v4612_v12 }
 0x40d   :  { %v2413_v53 = vadd.f32 %v2412_v63, %v2411_v57  ;;  %v2430_v24 = vadd.f32 %v2429_v26, %v2428_v56  ;;  %v4705_v49 = vpop.eup %3746  ;;  %3760 = vpow2.f32 %v2370_v19  ;;  %v3556_v1 = vpack.c.bf16 %v2465_v18, %v2464_v5 }
 0x40e   :  { %3551 = vmatpush3.bf16.msra.mxu0 %v3550_v39  ;;  %v4707_v43 = vpop.eup %3748  ;;  %v2435_v2 = vsel %vm923_vm2, %v4705_v49, 0.0  ;;  %v3559_v31 = vpack.c.bf16 %v2467_v21, %v2466_v30  ;;  %v2493_v39 = vpop.permute.xlu0 %2492 }
 0x40f   :  { %3762 = vrcp.f32 %v2413_v53  ;;  %v2431_v38 = vrot.slane %v2430_v24, 2  ;;  %3552 = vmatprep.subr.bf16.mxu0 %v3770_v40  ;;  %v4712_v36 = vpop.eup %3750  ;;  %v2436_v12 = vsel %vm923_vm2, %v4707_v43, 0.0 }
 0x410   :  { %v4716_v59 = vpop.eup %3752  ;;  %v2437_v16 = vadd.f32 %v2436_v12, %v2435_v2  ;;  %v2438_v25 = vsel %vm923_vm2, %v4712_v36, 0.0 }
 0x411   :  { %v2432_v23 = vadd.f32 %v2431_v38, %v2430_v24  ;;  %v4720_v6 = vpop.eup %3754  ;;  %v2440_v48 = vsel %vm923_vm2, %v4716_v59, 0.0 }
 0x412   :  { %3554 = vmatpush3.bf16.msra.mxu0 %v3553_v52  ;;  %v2439_v58 = vadd.f32 %v2438_v25, %v2437_v16  ;;  %v4723_v61 = vpop.eup %3756  ;;  %v2442_v54 = vsel %vm923_vm2, %v4720_v6, 0.0 }
 0x413   :  { %v2433_v50 = vrot.slane %v2432_v23, 1  ;;  %3555 = vmatprep.subr.bf16.mxu0 %v3770_v40  ;;  %v4727_v47 = vpop.eup %3758  ;;  %v2444_v29 = vsel %vm923_vm2, %v4723_v61, 0.0 }
 0x414   :  { %v2441_v33 = vadd.f32 %v2440_v48, %v2439_v58  ;;  %v2446_v57 = vsel %vm923_vm2, %v4727_v47, 0.0 }
 0x415   :  { %v2434_v9 = vadd.f32 %v2433_v50, %v2432_v23 }
 0x416   :  { %3557 = vmatpush3.bf16.msra.mxu0 %v3556_v1  ;;  %v2443_v17 = vadd.f32 %v2442_v54, %v2441_v33 }
 0x417   :  { %3764 = vrcp.f32 %v2434_v9  ;;  %3558 = vmatprep.subr.bf16.mxu0 %v3770_v40  ;;  %v4732_v55 = vpop.eup %3760 }
 0x418   :  { %v2445_v19 = vadd.f32 %v2444_v29, %v2443_v17 }
 0x419   :  { %v3763_v10 = vpop.eup %3762 }
 0x41a   :  { %v2468_v56 = vmul.f32 %v3763_v10, %v4625_v44  ;;  %v2469_v42 = vmul.f32 %v3763_v10, %v4627_v15  ;;  %v2470_v32 = vmul.f32 %v3763_v10, %v4631_v13  ;;  %v2471_v14 = vmul.f32 %v3763_v10, %v4635_v3  ;;  %3560 = vmatpush3.bf16.msra.mxu0 %v3559_v31 }
 0x41b   :  { %v2447_v45 = vadd.f32 %v2446_v57, %v2445_v19  ;;  %v2472_v63 = vmul.f32 %v3763_v10, %v4637_v4  ;;  %v2473_v26 = vmul.f32 %v3763_v10, %v4641_v7  ;;  %3573 = vmatprep.subr.bf16.mxu0 %v3770_v40  ;;  %v2474_v5 = vmul.f32 %v3763_v10, %v4643_v60 }
 0x41c   :  { %v2448_v44 = vsel %vm923_vm2, %v4732_v55, 0.0  ;;  %v3562_v52 = vpack.c.bf16 %v2469_v42, %v2468_v56  ;;  %v3565_v15 = vpack.c.bf16 %v2471_v14, %v2470_v32  ;;  %v2475_v13 = vmul.f32 %v3763_v10, %v4647_v22  ;;  %v48_v56 = vld [vmem:[%s4837_s3] sm:$0xff] }
 0x41d   :  { %v2449_v18 = vadd.f32 %v2448_v44, %v2447_v45  ;;  %v3568_v3 = vpack.c.bf16 %v2473_v26, %v2472_v63  ;;  %3420 = vmatmul.mubr.msk.f32.vlgmr.msra.gmra.mrb[38].mxu0 %vm923_vm2, %v2493_v39  ;;  %v53_v45 = vld [vmem:[%s4836_s4 + $0x8] sm:$0xff]  ;;  %v55_v63 = vld [vmem:[%s4836_s4 + $0x18] sm:$0xff] }
 0x41e   :  { %3563 = vmatpush3.bf16.msra.mxu1 %v3562_v52  ;;  %v3571_v4 = vpack.c.bf16 %v2475_v13, %v2474_v5  ;;  %3457 = vmatprep.mubr.msk.f32.mxu0 %vm3771_vm3, %v3772_v46 }
 0x41f   :  { %v2450_v7 = vrot.slane %v2449_v18, 4  ;;  %3564 = vmatprep.subr.bf16.mxu1 %v3770_v40 }
 0x421   :  { %v3765_v60 = vpop.eup %3764  ;;  %v2451_v30 = vadd.f32 %v2450_v7, %v2449_v18 }
 0x422   :  { %3566 = vmatpush3.bf16.msra.mxu1 %v3565_v15  ;;  %v2476_v53 = vmul.f32 %v3765_v60, %v4649_v37  ;;  %v2477_v24 = vmul.f32 %v3765_v60, %v4653_v8  ;;  %v2478_v22 = vmul.f32 %v3765_v60, %v4657_v35  ;;  %v2479_v21 = vmul.f32 %v3765_v60, %v4663_v11 }
 0x423   :  { %v2452_v1 = vrot.slane %v2451_v30, 2  ;;  %3567 = vmatprep.subr.bf16.mxu1 %v3770_v40  ;;  %v2480_v38 = vmul.f32 %v3765_v60, %v4671_v27  ;;  %v2481_v2 = vmul.f32 %v3765_v60, %v4681_v62  ;;  %v2482_v31 = vmul.f32 %v3765_v60, %v4687_v20  ;;  %v2567_v27 = vpop.permute.xlu1 %2566  ;;  %v2641_v62 = vpop.permute.xlu0 %2640 }
 0x424   :  { %v3574_v12 = vpack.c.bf16 %v2477_v24, %v2476_v53  ;;  %v3577_v23 = vpack.c.bf16 %v2479_v21, %v2478_v22  ;;  %v2483_v16 = vmul.f32 %v3765_v60, %v4691_v34 }
 0x425   :  { %v2453_v37 = vadd.f32 %v2452_v1, %v2451_v30  ;;  %v3580_v25 = vpack.c.bf16 %v2481_v2, %v2480_v38 }
 0x426   :  { %3569 = vmatpush3.bf16.msra.mxu1 %v3568_v3  ;;  %3575 = vmatpush3.bf16.msra.mxu0 %v3574_v12  ;;  %v3583_v8 = vpack.c.bf16 %v2483_v16, %v2482_v31 }
 0x427   :  { %v2454_v35 = vrot.slane %v2453_v37, 1  ;;  %3570 = vmatprep.subr.bf16.mxu1 %v3770_v40  ;;  %3576 = vmatprep.subr.bf16.mxu0 %v3770_v40 }
 0x429   :  { %v2455_v11 = vadd.f32 %v2454_v35, %v2453_v37 }
 0x42a   :  { %3572 = vmatpush3.bf16.msra.mxu1 %v3571_v4  ;;  %3578 = vmatpush3.bf16.msra.mxu0 %v3577_v23 }
 0x42b   :  { %3766 = vrcp.f32 %v2455_v11  ;;  %3585 = vmatprep.subr.bf16.mxu1 %v3770_v40  ;;  %3579 = vmatprep.subr.bf16.mxu0 %v3770_v40 }
 0x42d   :  { %3439 = vmatmul.mubr.msk.f32.vlgmr.msra.gmra.mrb[46].mxu1 %vm923_vm2, %v2567_v27 }
 0x42e   :  { %3581 = vmatpush3.bf16.msra.mxu0 %v3580_v25  ;;  %3476 = vmatprep.mubr.msk.f32.mxu1 %vm3771_vm3, %v3772_v46 }
 0x42f   :  { %3582 = vmatprep.subr.bf16.mxu0 %v3770_v40 }
 0x432   :  { %3584 = vmatpush3.bf16.msra.mxu0 %v3583_v8 }
 0x435   :  { %v3767_v20 = vpop.eup %3766  ;;  %3458 = vmatmul.mubr.msk.f32.vlgmr.msra.gmra.mrb[40].mxu0 %vm923_vm2, %v2641_v62 }
 0x436   :  { %v2484_v34 = vmul.f32 %v3767_v20, %v4705_v49  ;;  %v2485_v50 = vmul.f32 %v3767_v20, %v4707_v43  ;;  %v2486_v58 = vmul.f32 %v3767_v20, %v4712_v36  ;;  %v2487_v48 = vmul.f32 %v3767_v20, %v4716_v59  ;;  %v2715_v49 = vpop.permute.xlu0 %2714  ;;  %3487 = vmatprep.mubr.msk.f32.mxu0 %vm116_vm0, %v48_v56 }
 0x437   :  { %v2488_v9 = vmul.f32 %v3767_v20, %v4720_v6  ;;  %v2489_v33 = vmul.f32 %v3767_v20, %v4723_v61  ;;  %v2490_v46 = vmul.f32 %v3767_v20, %v4727_v47  ;;  %v2491_v54 = vmul.f32 %v3767_v20, %v4732_v55  ;;  %v52_v47 = vld [vmem:[%s4836_s4] sm:$0xff] }
 0x438   :  { %v3586_v17 = vpack.c.bf16 %v2485_v50, %v2484_v34  ;;  %v3589_v29 = vpack.c.bf16 %v2487_v48, %v2486_v58 }
 0x439   :  { %v3592_v10 = vpack.c.bf16 %v2489_v33, %v2488_v9  ;;  %v3595_v19 = vpack.c.bf16 %v2491_v54, %v2490_v46 }
 0x43a   :  { %3587 = vmatpush3.bf16.msra.mxu1 %v3586_v17 }
 0x43b   :  { %3588 = vmatprep.subr.bf16.mxu1 %v3770_v40 }
 0x43e   :  { %3590 = vmatpush3.bf16.msra.mxu1 %v3589_v29 }
 0x43f   :  { %3591 = vmatprep.subr.bf16.mxu1 %v3770_v40 }
 0x442   :  { %3593 = vmatpush3.bf16.msra.mxu1 %v3592_v10 }
 0x443   :  { %3594 = vmatprep.subr.bf16.mxu1 %v3770_v40  ;;  %v54_v40 = vld [vmem:[%s4836_s4 + $0x10] sm:$0xff] }
 0x446   :  { %3596 = vmatpush3.bf16.msra.mxu1 %v3595_v19 }
 0x449   :  { %3477 = vmatmul.mubr.msk.f32.vlgmr.msra.gmra.mrb[48].mxu1 %vm923_vm2, %v2715_v49 }
 0x4f0   :  { %v2562_v43 = vpop.f32.mrb[38].mxu0 }
 0x4f1   :  { %v3421_v36 = vpop.f32.mrb[39].mxu0 }
 0x500   :  { %v2636_v59 = vpop.f32.mrb[46].mxu1 }
 0x501   :  { %v3614_v6 = vpack.i.bf16 %v2636_v59, %v2562_v43  ;;  %v3440_v61 = vpop.f32.mrb[47].mxu1 }
 0x503   :  { %3615 = vrot.lane.b32.xlu0 %v3614_v6, %s3769_s1 }
 0x507   :  { %2810 = vperm.xlu0 %3612, %v52_v47  }
 0x508   :  { %v2710_v55 = vpop.f32.mrb[40].mxu0 }
 0x509   :  { %v3459_v57 = vpop.f32.mrb[41].mxu0 }
 0x50b   :  { %2820 = vperm.xlu0 %3612, %v54_v40  }
 0x51c   :  { %v2784_v42 = vpop.f32.mrb[48].mxu1 }
 0x51d   :  { %v3619_v32 = vpack.i.bf16 %v2784_v42, %v2710_v55  ;;  %v3478_v14 = vpop.f32.mrb[49].mxu1 }
 0x51f   :  { %3620 = vrot.lane.b32.xlu1 %v3619_v32, %s3769_s1 }
 0x523   :  { %2815 = vperm.xlu1 %3613, %v53_v45  }
 0x527   :  { %2825 = vperm.xlu1 %3613, %v55_v63  }
 0x575   :  { %v3616_v26 = vpop.permute.xlu0 %3615 }
 0x576   :  { %v3618_v5 = vunpack.i.h.bf16 %v3616_v26  ;;  %v3617_v39 = vunpack.i.l.bf16 %v3616_v26 }
 0x578   :  { %v2804_v44 = vsel %vm923_vm2, %v4420_v0, %v3617_v39  ;;  %v2805_v52 = vsel %vm923_vm2, %v4422_v28, %v3618_v5  ;;  %v49_v0 = vld [vmem:[%s4837_s3 + $0x8] sm:$0xff]  ;;  %v50_v28 = vld [vmem:[%s4837_s3 + $0x10] sm:$0xff] }
 0x579   :  { %v3597_v15 = vpack.c.bf16 %v2805_v52, %v2804_v44 }
 0x57b   :  { %3598 = vmatprep.subr.bf16.mxu0 %v3597_v15 }
 0x57c   :  { %3600 = vmatpush3.bf16.msra.mxu0 %v3597_v15 }
 0x586   :  { %v2811_v30 = vpop.permute.xlu0 %2810 }
 0x58a   :  { %v2821_v2 = vpop.permute.xlu0 %2820 }
 0x591   :  { %v3621_v13 = vpop.permute.xlu1 %3620 }
 0x592   :  { %v3623_v18 = vunpack.i.h.bf16 %v3621_v13  ;;  %v3622_v3 = vunpack.i.l.bf16 %v3621_v13 }
 0x594   :  { %v2806_v4 = vsel %vm923_vm2, %v4424_v51, %v3622_v3  ;;  %v2807_v7 = vsel %vm923_vm2, %v4434_v41, %v3623_v18  ;;  %v51_v51 = vld [vmem:[%s4837_s3 + $0x18] sm:$0xff] }
 0x595   :  { %v3601_v60 = vpack.c.bf16 %v2807_v7, %v2806_v4 }
 0x597   :  { %3602 = vmatprep.subr.bf16.mxu0 %v3601_v60 }
 0x598   :  { %3604 = vmatpush3.bf16.msra.mxu0 %v3601_v60 }
 0x59b   :  { %3488 = vmatmul.mubr.msk.f32.vlgmr.msra.gmra.mrb[42].mxu0 %vm116_vm0, %v49_v0 }
 0x59c   :  { %3490 = vmatprep.mubr.msk.f32.mxu0 %vm116_vm0, %v50_v28 }
 0x59f   :  { %3491 = vmatmul.mubr.msk.f32.gmra.mrb[44].mxu0 %vm116_vm0, %v51_v51 }
 0x5a2   :  { %v2816_v41 = vpop.permute.xlu1 %2815 }
 0x5a6   :  { %v2826_v1 = vpop.permute.xlu1 %2825 }
 0x66e   :  { %v3489_v53 = vpop.f32.mrb[42].mxu0 }
 0x66f   :  { %v2912_v24 = vadd.f32 %v3489_v53, %v2816_v41  ;;  %v2906_v22 = vpop.f32.mrb[43].mxu0 }
 0x670   :  { %v2907_v21 = vadd.f32 %v2906_v22, %v2811_v30 }
 0x671   :  { %2926 = vst [vmem:[%s4838_s5 + $0x8] sm:$0xff] %v2912_v24 }
 0x672   :  { %2925 = vst [vmem:[%s4838_s5] sm:$0xff] %v2907_v21  ;;  %v3492_v38 = vpop.f32.mrb[44].mxu0 }
 0x673   :  { %v2922_v31 = vadd.f32 %v3492_v38, %v2826_v1  ;;  %v2916_v12 = vpop.f32.mrb[45].mxu0 }
 0x674   :  { %v2917_v23 = vadd.f32 %v2916_v12, %v2821_v2 }
 0x675   :  { %2928 = vst [vmem:[%s4838_s5 + $0x18] sm:$0xff] %v2922_v31 }
 0x676   :  { %2927 = vst [vmem:[%s4838_s5 + $0x10] sm:$0xff] %v2917_v23 }

</bundles_post_ra>
